<compile_context>
chip_gen: v5e
topology: v5e:2x2
jax: 0.10.0
libtpu: 0.0.40
codegen_flags: <defaults>
</compile_context>

<pallas_src>
import jax
import jax.numpy as jnp
from jax.experimental import pallas as pl
from jax.experimental.pallas import tpu as pltpu

INPUT_DIM = 64
H1 = 200
H2 = 100
H1P = 256          # H1 padded to a lane multiple
H2P = 128          # H2 padded to a lane multiple
TARGET_DIM = 1
LN_EPS = 1e-5


def _round_up(n, m):
    return ((n + m - 1) // m) * m


def _layernorm(h, gamma, beta, n):
    # LayerNorm over the last axis with an explicit (true, un-padded) feature
    # count n; biased variance (matches torch). Padded lanes of h are exactly 0
    # so they contribute nothing to either reduction, and gamma=beta=0 on those
    # lanes keeps the output 0 there.
    inv_n = 1.0 / n
    s = jnp.sum(h, axis=-1, keepdims=True)
    sq = jnp.sum(h * h, axis=-1, keepdims=True)
    mean = s * inv_n
    var = sq * inv_n - mean * mean
    inv = jax.lax.rsqrt(var + LN_EPS)           # EUP
    return (h - mean) * inv * gamma + beta      # 4 fused VPU ops


def discriminator_kernel(x_ref, w1_ref, v1_ref, w2_ref, v2_ref, w3_ref, b3_ref, o_ref):
    # x_ref: (bb, 64) f32 (producer dtype); cast to the matmul dtype in VMEM.
    # w1_ref: (64, 256) bf16, w2_ref: (256, 128) bf16.
    # v1_ref: (3, 256) = [bias; gamma; beta] f32, v2_ref: (3, 128) likewise.
    # w3_ref: (1, 128) f32 row, b3_ref: (1, 1) f32.
    x = x_ref[...].astype(w1_ref.dtype)

    # Linear(64 -> 200[256]) + LayerNorm(200) + ReLU   (f32 accumulation)
    h1 = jnp.dot(x, w1_ref[...], preferred_element_type=jnp.float32) + v1_ref[0:1, :]
    h1 = _layernorm(h1, v1_ref[1:2, :], v1_ref[2:3, :], H1)
    h1 = jnp.maximum(h1, 0.0)

    # Linear(200 -> 100[128]) + LayerNorm(100) + ReLU
    h2 = jnp.dot(h1.astype(w2_ref.dtype), w2_ref[...],
                 preferred_element_type=jnp.float32) + v2_ref[0:1, :]
    h2 = _layernorm(h2, v2_ref[1:2, :], v2_ref[2:3, :], H2)
    h2 = jnp.maximum(h2, 0.0)

    # Linear(100 -> 1): VPU multiply + lane reduction (avoid degenerate N=1 MXU
    # matmul), written lane-dense as a (1, bb) row. Padded w3 lanes are zero.
    logits = jnp.sum(h2 * w3_ref[...], axis=-1)            # (bb,)
    o_ref[...] = (logits[None, :] + b3_ref[...]).astype(o_ref.dtype)


def discriminator_forward(x, params, *, batch_block=1024, matmul_dtype=jnp.bfloat16):
    B = x.shape[0]
    (w1, b1, g1, be1, w2, b2, g2, be2, w3, b3) = params

    # --- batch tiling --------------------------------------------------------
    b128 = _round_up(B, 128)
    bb = min(_round_up(batch_block, 128), b128)
    # v7x has 2 TensorCores; keep >= 2 (parallel) grid steps when the batch is
    # large enough so both cores get work. No-op on v5e/v6e beyond extra steps.
    if bb >= b128 and b128 >= 2 * 128:
        bb = _round_up(pl.cdiv(b128, 2), 128)
    num_blocks = pl.cdiv(B, bb)
    B_pad = num_blocks * bb

    # Zero-pad batch only; keep producer dtype (f32) — the bf16 cast happens
    # inside the kernel, halving x-related HBM traffic vs a wrapper-side cast.
    x_p = x if B_pad == B else jnp.pad(x, ((0, B_pad - B), (0, 0)))

    # --- parameter packing / lane padding (done once, outside the kernel) ----
    def pad_cols(a, cols):
        return jnp.pad(a, ((0, 0), (0, cols - a.shape[1])))

    w1m = pad_cols(w1, H1P).astype(matmul_dtype)                        # (64, 256)
    w2m = jnp.pad(w2, ((0, H1P - H1), (0, H2P - H2))).astype(matmul_dtype)  # (256, 128)
    v1 = pad_cols(jnp.concatenate([b1, g1, be1], axis=0), H1P).astype(jnp.float32)  # (3, 256)
    v2 = pad_cols(jnp.concatenate([b2, g2, be2], axis=0), H2P).astype(jnp.float32)  # (3, 128)
    w3_row = pad_cols(w3.T, H2P).astype(jnp.float32)                    # (1, 128)
    b3_s = b3.reshape(1, 1).astype(jnp.float32)                         # (1, 1)

    def full_spec(a):
        nd = a.ndim
        return pl.BlockSpec(a.shape, lambda i, _nd=nd: (0,) * _nd)

    # --- VMEM budget (covers v5e's 16 MiB scoped default at large bb) --------
    weight_bytes = ((INPUT_DIM * H1P + H1P * H2P) * 2
                    + (3 * (H1P + H2P) + H2P + 1) * 4)
    est_vmem = (2 * bb * INPUT_DIM * 4        # x tile f32, double-buffered
                + bb * H1P * 6                # h1 f32 + bf16 copy
                + bb * H2P * 4                # h2 f32
                + 2 * bb * 4                  # output row, double-buffered
                + weight_bytes)
    vmem_limit = int(min(60 * 2**20, max(32 * 2**20, 2 * est_vmem)))

    cost = pl.CostEstimate(
        flops=2 * B_pad * (INPUT_DIM * H1 + H1 * H2 + H2),
        transcendentals=2 * B_pad,                       # one rsqrt per LN row
        bytes_accessed=B_pad * INPUT_DIM * 4 + B_pad * 4 + weight_bytes,
    )

    out_row = pl.pallas_call(
        discriminator_kernel,
        out_shape=jax.ShapeDtypeStruct((1, B_pad), jnp.float32),
        grid=(num_blocks,),
        in_specs=[
            pl.BlockSpec((bb, INPUT_DIM), lambda i: (i, 0)),   # x tiled over batch
            full_spec(w1m), full_spec(v1),
            full_spec(w2m), full_spec(v2),
            full_spec(w3_row), full_spec(b3_s),
        ],
        out_specs=pl.BlockSpec((1, bb), lambda i: (0, i)),     # lane-dense output
        compiler_params=pltpu.CompilerParams(
            dimension_semantics=("parallel",),                 # shards across TCs on v7x
            vmem_limit_bytes=vmem_limit,
        ),
        cost_estimate=cost,
    )(x_p, w1m, v1, w2m, v2, w3_row, b3_s)

    return out_row.reshape(B_pad, TARGET_DIM)[:B]


def init_params(key):
    # Deterministic synthetic init. Linear weights stored transposed: (in, out).
    ks = jax.random.split(key, 6)

    def linear(kw, kb, fan_in, fan_out):
        bound = 1.0 / jnp.sqrt(fan_in)
        w = jax.random.uniform(kw, (fan_in, fan_out), jnp.float32, -bound, bound)
        b = jax.random.uniform(kb, (1, fan_out), jnp.float32, -bound, bound)
        return w, b

    w1, b1 = linear(ks[0], ks[1], INPUT_DIM, H1)
    w2, b2 = linear(ks[2], ks[3], H1, H2)
    w3, b3 = linear(ks[4], ks[5], H2, TARGET_DIM)

    # LayerNorm affine params (torch default: ones / zeros).
    g1, be1 = jnp.ones((1, H1), jnp.float32), jnp.zeros((1, H1), jnp.float32)
    g2, be2 = jnp.ones((1, H2), jnp.float32), jnp.zeros((1, H2), jnp.float32)

    return (w1, b1, g1, be1, w2, b2, g2, be2, w3, b3)


def reference_forward(x, params, matmul_dtype=jnp.bfloat16):
    # Pure-JAX reference using the same precision choices as the kernel
    # (bf16 MXU operands, f32 LayerNorm / head).
    (w1, b1, g1, be1, w2, b2, g2, be2, w3, b3) = params
    h = jnp.dot(x.astype(matmul_dtype), w1.astype(matmul_dtype),
                preferred_element_type=jnp.float32) + b1
    h = _layernorm(h, g1, be1, H1)
    h = jnp.maximum(h, 0.0)
    h = jnp.dot(h.astype(matmul_dtype), w2.astype(matmul_dtype),
                preferred_element_type=jnp.float32) + b2
    h = _layernorm(h, g2, be2, H2)
    h = jnp.maximum(h, 0.0)
    return h @ w3 + b3


if __name__ == "__main__":
    key = jax.random.PRNGKey(0)
    k_param, k_x = jax.random.split(key)

    params = init_params(k_param)
    x = jax.random.normal(k_x, (16, INPUT_DIM), jnp.float32)

    out = discriminator_forward(x, params)
    out = jax.block_until_ready(out)

    ref = reference_forward(x, params)
    assert out.shape == (16, TARGET_DIM)
    assert jnp.allclose(out, ref, atol=1e-3, rtol=1e-3), "mismatch vs JAX reference"

    print("KERNEL_OK")
</pallas_src>

<mosaic_0001>
module attributes {stable_mosaic.version = 11 : i64} {
  func.func @discriminator_kernel(%arg0: i32, %arg1: memref<128x64xf32, #tpu.memory_space<vmem>>, %arg2: memref<64x256xbf16, #tpu.memory_space<vmem>>, %arg3: memref<3x256xf32, #tpu.memory_space<vmem>>, %arg4: memref<256x128xbf16, #tpu.memory_space<vmem>>, %arg5: memref<3x128xf32, #tpu.memory_space<vmem>>, %arg6: memref<1x128xf32, #tpu.memory_space<vmem>>, %arg7: memref<1x1xf32, #tpu.memory_space<vmem>>, %arg8: memref<1x128xf32, #tpu.memory_space<vmem>>) attributes {dimension_semantics = [#tpu.dimension_semantics<parallel>], iteration_bounds = array<i64: 1>, scalar_prefetch = 0 : i64, scratch_operands = 0 : i64, tpu.core_type = #tpu.core_type<tc>, window_params = [{transform_indices = @transform_0, window_bounds = array<i64: 128, 64>}, {pipeline_mode = #tpu.pipeline_mode<synchronous>, transform_indices = @transform_1, window_bounds = array<i64: 64, 256>}, {pipeline_mode = #tpu.pipeline_mode<synchronous>, transform_indices = @transform_2, window_bounds = array<i64: 3, 256>}, {pipeline_mode = #tpu.pipeline_mode<synchronous>, transform_indices = @transform_3, window_bounds = array<i64: 256, 128>}, {pipeline_mode = #tpu.pipeline_mode<synchronous>, transform_indices = @transform_4, window_bounds = array<i64: 3, 128>}, {pipeline_mode = #tpu.pipeline_mode<synchronous>, transform_indices = @transform_5, window_bounds = array<i64: 1, 128>}, {pipeline_mode = #tpu.pipeline_mode<synchronous>, transform_indices = @transform_6, window_bounds = array<i64: 1, 1>}, {transform_indices = @transform_7, window_bounds = array<i64: 1, 128>}]} {
    %c0 = arith.constant 0 : index
    %c0_0 = arith.constant 0 : index
    %0 = vector.load %arg1[%c0, %c0_0] : memref<128x64xf32, #tpu.memory_space<vmem>>, vector<128x64xf32>
    %1 = arith.truncf %0 : vector<128x64xf32> to vector<128x64xbf16>
    %c0_1 = arith.constant 0 : index
    %c0_2 = arith.constant 0 : index
    %2 = vector.load %arg2[%c0_1, %c0_2] : memref<64x256xbf16, #tpu.memory_space<vmem>>, vector<64x256xbf16>
    %cst = arith.constant dense<0.000000e+00> : vector<128x256xf32>
    %3 = tpu.matmul %1, %2, %cst {dimension_numbers = #tpu.dot_dimension_numbers<[1], [0], [0], [1], [0, 0, 1, 1], [], []>} : vector<128x64xbf16>, vector<64x256xbf16>, vector<128x256xf32> -> vector<128x256xf32>
    %c0_3 = arith.constant 0 : index
    %c0_4 = arith.constant 0 : index
    %4 = vector.load %arg3[%c0_3, %c0_4] : memref<3x256xf32, #tpu.memory_space<vmem>>, vector<1x256xf32>
    %5 = vector.broadcast %4 : vector<1x256xf32> to vector<128x256xf32>
    %6 = arith.addf %3, %5 : vector<128x256xf32>
    %c1 = arith.constant 1 : index
    %c0_5 = arith.constant 0 : index
    %7 = vector.load %arg3[%c1, %c0_5] : memref<3x256xf32, #tpu.memory_space<vmem>>, vector<1x256xf32>
    %c2 = arith.constant 2 : index
    %c0_6 = arith.constant 0 : index
    %8 = vector.load %arg3[%c2, %c0_6] : memref<3x256xf32, #tpu.memory_space<vmem>>, vector<1x256xf32>
    %cst_7 = arith.constant dense<0.000000e+00> : vector<128xf32>
    %9 = vector.multi_reduction <add>, %6, %cst_7 [1] : vector<128x256xf32> to vector<128xf32>
    %10 = vector.shape_cast %9 : vector<128xf32> to vector<128x1xf32>
    %11 = arith.mulf %6, %6 : vector<128x256xf32>
    %cst_8 = arith.constant dense<0.000000e+00> : vector<128xf32>
    %12 = vector.multi_reduction <add>, %11, %cst_8 [1] : vector<128x256xf32> to vector<128xf32>
    %13 = vector.shape_cast %12 : vector<128xf32> to vector<128x1xf32>
    %cst_9 = arith.constant 5.000000e-03 : f32
    %14 = vector.broadcast %cst_9 : f32 to vector<128x1xf32>
    %15 = arith.mulf %10, %14 : vector<128x1xf32>
    %cst_10 = arith.constant 5.000000e-03 : f32
    %16 = vector.broadcast %cst_10 : f32 to vector<128x1xf32>
    %17 = arith.mulf %13, %16 : vector<128x1xf32>
    %18 = arith.mulf %15, %15 : vector<128x1xf32>
    %19 = arith.subf %17, %18 : vector<128x1xf32>
    %cst_11 = arith.constant 9.99999974E-6 : f32
    %20 = vector.broadcast %cst_11 : f32 to vector<128x1xf32>
    %21 = arith.addf %19, %20 : vector<128x1xf32>
    %22 = math.rsqrt %21 : vector<128x1xf32>
    %23 = vector.broadcast %15 : vector<128x1xf32> to vector<128x256xf32>
    %24 = arith.subf %6, %23 : vector<128x256xf32>
    %25 = vector.broadcast %22 : vector<128x1xf32> to vector<128x256xf32>
    %26 = arith.mulf %24, %25 : vector<128x256xf32>
    %27 = vector.broadcast %7 : vector<1x256xf32> to vector<128x256xf32>
    %28 = arith.mulf %26, %27 : vector<128x256xf32>
    %29 = vector.broadcast %8 : vector<1x256xf32> to vector<128x256xf32>
    %30 = arith.addf %28, %29 : vector<128x256xf32>
    %cst_12 = arith.constant 0.000000e+00 : f32
    %31 = vector.broadcast %cst_12 : f32 to vector<128x256xf32>
    %32 = arith.maximumf %30, %31 : vector<128x256xf32>
    %33 = arith.truncf %32 : vector<128x256xf32> to vector<128x256xbf16>
    %c0_13 = arith.constant 0 : index
    %c0_14 = arith.constant 0 : index
    %34 = vector.load %arg4[%c0_13, %c0_14] : memref<256x128xbf16, #tpu.memory_space<vmem>>, vector<256x128xbf16>
    %cst_15 = arith.constant dense<0.000000e+00> : vector<128x128xf32>
    %35 = tpu.matmul %33, %34, %cst_15 {dimension_numbers = #tpu.dot_dimension_numbers<[1], [0], [0], [1], [0, 0, 1, 1], [], []>} : vector<128x256xbf16>, vector<256x128xbf16>, vector<128x128xf32> -> vector<128x128xf32>
    %c0_16 = arith.constant 0 : index
    %c0_17 = arith.constant 0 : index
    %36 = vector.load %arg5[%c0_16, %c0_17] : memref<3x128xf32, #tpu.memory_space<vmem>>, vector<1x128xf32>
    %37 = vector.broadcast %36 : vector<1x128xf32> to vector<128x128xf32>
    %38 = arith.addf %35, %37 : vector<128x128xf32>
    %c1_18 = arith.constant 1 : index
    %c0_19 = arith.constant 0 : index
    %39 = vector.load %arg5[%c1_18, %c0_19] : memref<3x128xf32, #tpu.memory_space<vmem>>, vector<1x128xf32>
    %c2_20 = arith.constant 2 : index
    %c0_21 = arith.constant 0 : index
    %40 = vector.load %arg5[%c2_20, %c0_21] : memref<3x128xf32, #tpu.memory_space<vmem>>, vector<1x128xf32>
    %cst_22 = arith.constant dense<0.000000e+00> : vector<128xf32>
    %41 = vector.multi_reduction <add>, %38, %cst_22 [1] : vector<128x128xf32> to vector<128xf32>
    %42 = vector.shape_cast %41 : vector<128xf32> to vector<128x1xf32>
    %43 = arith.mulf %38, %38 : vector<128x128xf32>
    %cst_23 = arith.constant dense<0.000000e+00> : vector<128xf32>
    %44 = vector.multi_reduction <add>, %43, %cst_23 [1] : vector<128x128xf32> to vector<128xf32>
    %45 = vector.shape_cast %44 : vector<128xf32> to vector<128x1xf32>
    %cst_24 = arith.constant 0.00999999977 : f32
    %46 = vector.broadcast %cst_24 : f32 to vector<128x1xf32>
    %47 = arith.mulf %42, %46 : vector<128x1xf32>
    %cst_25 = arith.constant 0.00999999977 : f32
    %48 = vector.broadcast %cst_25 : f32 to vector<128x1xf32>
    %49 = arith.mulf %45, %48 : vector<128x1xf32>
    %50 = arith.mulf %47, %47 : vector<128x1xf32>
    %51 = arith.subf %49, %50 : vector<128x1xf32>
    %cst_26 = arith.constant 9.99999974E-6 : f32
    %52 = vector.broadcast %cst_26 : f32 to vector<128x1xf32>
    %53 = arith.addf %51, %52 : vector<128x1xf32>
    %54 = math.rsqrt %53 : vector<128x1xf32>
    %55 = vector.broadcast %47 : vector<128x1xf32> to vector<128x128xf32>
    %56 = arith.subf %38, %55 : vector<128x128xf32>
    %57 = vector.broadcast %54 : vector<128x1xf32> to vector<128x128xf32>
    %58 = arith.mulf %56, %57 : vector<128x128xf32>
    %59 = vector.broadcast %39 : vector<1x128xf32> to vector<128x128xf32>
    %60 = arith.mulf %58, %59 : vector<128x128xf32>
    %61 = vector.broadcast %40 : vector<1x128xf32> to vector<128x128xf32>
    %62 = arith.addf %60, %61 : vector<128x128xf32>
    %cst_27 = arith.constant 0.000000e+00 : f32
    %63 = vector.broadcast %cst_27 : f32 to vector<128x128xf32>
    %64 = arith.maximumf %62, %63 : vector<128x128xf32>
    %c0_28 = arith.constant 0 : index
    %c0_29 = arith.constant 0 : index
    %65 = vector.load %arg6[%c0_28, %c0_29] : memref<1x128xf32, #tpu.memory_space<vmem>>, vector<1x128xf32>
    %66 = vector.broadcast %65 : vector<1x128xf32> to vector<128x128xf32>
    %67 = arith.mulf %64, %66 : vector<128x128xf32>
    %cst_30 = arith.constant dense<0.000000e+00> : vector<128xf32>
    %68 = vector.multi_reduction <add>, %67, %cst_30 [1] : vector<128x128xf32> to vector<128xf32>
    %69 = vector.shape_cast %68 : vector<128xf32> to vector<1x128xf32>
    %c0_31 = arith.constant 0 : index
    %c0_32 = arith.constant 0 : index
    %70 = vector.load %arg7[%c0_31, %c0_32] : memref<1x1xf32, #tpu.memory_space<vmem>>, vector<1x1xf32>
    %71 = vector.broadcast %70 : vector<1x1xf32> to vector<1x128xf32>
    %72 = arith.addf %69, %71 : vector<1x128xf32>
    %c0_33 = arith.constant 0 : index
    %c0_34 = arith.constant 0 : index
    %73 = vector.load %arg8[%c0_33, %c0_34] : memref<1x128xf32, #tpu.memory_space<vmem>>, vector<1x128xf32>
    tpu.vector_store %arg8[%c0_33, %c0_34], %72 {strides = array<i32>} : memref<1x128xf32, #tpu.memory_space<vmem>>, vector<1x128xf32>,
    return
  }
  func.func @transform_0(%arg0: i32) -> (i32, i32) {
    %c0_i32 = arith.constant 0 : i32
    %c0_i32_0 = arith.constant 0 : i32
    return %arg0, %c0_i32 : i32, i32
  }
  func.func @transform_1(%arg0: i32) -> (i32, i32) {
    %c0_i32 = arith.constant 0 : i32
    %c0_i32_0 = arith.constant 0 : i32
    %c0_i32_1 = arith.constant 0 : i32
    return %c0_i32, %c0_i32_0 : i32, i32
  }
  func.func @transform_2(%arg0: i32) -> (i32, i32) {
    %c0_i32 = arith.constant 0 : i32
    %c0_i32_0 = arith.constant 0 : i32
    %c0_i32_1 = arith.constant 0 : i32
    return %c0_i32, %c0_i32_0 : i32, i32
  }
  func.func @transform_3(%arg0: i32) -> (i32, i32) {
    %c0_i32 = arith.constant 0 : i32
    %c0_i32_0 = arith.constant 0 : i32
    %c0_i32_1 = arith.constant 0 : i32
    return %c0_i32, %c0_i32_0 : i32, i32
  }
  func.func @transform_4(%arg0: i32) -> (i32, i32) {
    %c0_i32 = arith.constant 0 : i32
    %c0_i32_0 = arith.constant 0 : i32
    %c0_i32_1 = arith.constant 0 : i32
    return %c0_i32, %c0_i32_0 : i32, i32
  }
  func.func @transform_5(%arg0: i32) -> (i32, i32) {
    %c0_i32 = arith.constant 0 : i32
    %c0_i32_0 = arith.constant 0 : i32
    %c0_i32_1 = arith.constant 0 : i32
    return %c0_i32, %c0_i32_0 : i32, i32
  }
  func.func @transform_6(%arg0: i32) -> (i32, i32) {
    %c0_i32 = arith.constant 0 : i32
    %c0_i32_0 = arith.constant 0 : i32
    %c0_i32_1 = arith.constant 0 : i32
    return %c0_i32, %c0_i32_0 : i32, i32
  }
  func.func @transform_7(%arg0: i32) -> (i32, i32) {
    %c0_i32 = arith.constant 0 : i32
    %c0_i32_0 = arith.constant 0 : i32
    return %c0_i32, %arg0 : i32, i32
  }
}

</mosaic_0001>

<bundles_post_ra>
// kernel: tpu_custom_call.1
= control target key start
LH: loop header
LB: loop body
LE: loop exit
PB: predicated region body
PF: predicated region fallthrough
CT: control target
= control target key end

     0   :  { %s2874_s0 = inlined_call_operand.vmem [shape: f32[128,64], index: 0, kind: input, shape index: {}]   ;;  %s2875_s1 = inlined_call_operand.vmem [shape: bf16[64,256], index: 1, kind: input, shape index: {}]   ;;  %s2876_s2 = inlined_call_operand.hbm [shape: f32[3,256], index: 2, kind: input, shape index: {}]   ;;  %s2877_s3 = inlined_call_operand.vmem [shape: bf16[256,128], index: 3, kind: input, shape index: {}]   ;;  %s2878_s4 = inlined_call_operand.vmem [shape: f32[3,128], index: 4, kind: input, shape index: {}]   ;;  %s2879_s5 = inlined_call_operand.hbm [shape: f32[1,128], index: 5, kind: input, shape index: {}]   ;;  %s2880_s6 = inlined_call_operand.<no memory space> [shape: f32[1,1], index: 6, kind: input, shape index: {}]   ;;  %s2881_s7 = inlined_call_operand.hbm [shape: f32[1,128], index: 7, kind: output, shape index: {}]  }
   0x1   :  { %v12_v0 = vstv %s2880_s6 }
   0x2   :  { %13 = vst [vmem:[#allocation2] sm:$0x1] %v12_v0 }
   0x3   :  { %14 = vsyncpa [#allocation4], 0 }
   0x4   :  { %15 = vsyncpa [#allocation7], 0 }
   0x5   :  { %16 = vsyncpa [#allocation5], 0  ;;  %s26_s28 = sshll.u32 %s2876_s2, 4  ;;  %s1911_s29 = smov [#allocation3]   ;;  %s27_s28 = int_to_ptr.hbm [resolvable:$true] %s26_s28 }
   0x6   :  { %s28_s30 = sshll.u32 %s1911_s29, 4  ;;  %s41_s10 = sshll.u32 %s2879_s5, 4  ;;  %s29_s30 = int_to_ptr.vmem [resolvable:$true] %s28_s30  ;;  %s42_s10 = int_to_ptr.hbm [resolvable:$true] %s41_s10 }
   0x7   :  { %31 = dma.hbm_to_vmem [thread:$0]  %s27_s28, 128, %s29_s30, [#allocation4]  }
   0x8   :  { %s1912_s11 = smov [#allocation6]  }
   0x9   :  { %s43_s6 = sshll.u32 %s1912_s11, 4  ;;  %s44_s6 = int_to_ptr.vmem [resolvable:$true] %s43_s6 }
   0xa   :  { %46 = dma.hbm_to_vmem [thread:$0]  %s42_s10, 16, %s44_s6, [#allocation7]  }
   0xb   :  { %1905 = dma.done.wait [#allocation4], 128  }
   0xc   :  { %1906 = vsyncadd [#allocation4], 4294967168 }
   0xd   :  { %1907 = dma.done.wait [#allocation7], 16  }
   0xe   :  { %1908 = vsyncadd [#allocation7], 4294967280  ;;  %v1649_v1 = vld [vmem:[%s2875_s1 + $0x30] sm:$0xf]  ;;  %v1742_v2 = vld [vmem:[%s2875_s1 + $0x34] sm:$0xf0] }
   0xf   :  { %v1741_v3 = vld [vmem:[%s2875_s1 + $0x34] sm:$0xf]  ;;  %v1650_v4 = vor.u32 %v1742_v2, %v1649_v1  ;;  %v1651_v5 = vld [vmem:[%s2875_s1 + $0x38] sm:$0xf0]  ;;  %v1641_v6 = vld [vmem:[%s2875_s1 + $0x20] sm:$0xf] }
  0x10   :  { %v1740_v7 = vld [vmem:[%s2875_s1 + $0x24] sm:$0xf0]  ;;  %v1654_v8 = vor.u32 %v1741_v3, %v1651_v5  ;;  %v1739_v9 = vld [vmem:[%s2875_s1 + $0x24] sm:$0xf]  ;;  %v1643_v10 = vld [vmem:[%s2875_s1 + $0x28] sm:$0xf0] }
  0x11   :  { %165 = vmatpush.bf16.msra.mxu0 %v1650_v4  ;;  %v1642_v11 = vor.u32 %v1740_v7, %v1641_v6  ;;  %v1646_v12 = vor.u32 %v1739_v9, %v1643_v10  ;;  %v1633_v13 = vld [vmem:[%s2875_s1 + $0x10] sm:$0xf]  ;;  %v1738_v14 = vld [vmem:[%s2875_s1 + $0x14] sm:$0xf0]  ;;  %v1737_v15 = vld [vmem:[%s2875_s1 + $0x14] sm:$0xf] }
  0x12   :  { %214 = vmatpush.bf16.msra.mxu1 %v1654_v8  ;;  %v1635_v16 = vld [vmem:[%s2875_s1 + $0x18] sm:$0xf0]  ;;  %v1634_v17 = vor.u32 %v1738_v14, %v1633_v13  ;;  %v1625_v18 = vld [vmem:[%s2875_s1] sm:$0xf]  ;;  %v1736_v20 = vld [vmem:[%s2875_s1 + $0x4] sm:$0xf0] }
  0x13   :  { %v1638_v19 = vor.u32 %v1737_v15, %v1635_v16  ;;  %v1735_v21 = vld [vmem:[%s2875_s1 + $0x4] sm:$0xf]  ;;  %v1627_v22 = vld [vmem:[%s2875_s1 + $0x8] sm:$0xf0]  ;;  %v1626_v23 = vor.u32 %v1736_v20, %v1625_v18  ;;  %vm136_vm0 = vcmask 523264   ;;  %v60_v28 = vld [vmem:[%s2874_s0 + $0x10] sm:$0xff] }
  0x14   :  { %v58_v24 = vld [vmem:[%s2874_s0] sm:$0xff]  ;;  %v59_v25 = vld [vmem:[%s2874_s0 + $0x8] sm:$0xff]  ;;  %v1630_v26 = vor.u32 %v1735_v21, %v1627_v22  ;;  %v61_v29 = vld [vmem:[%s2874_s0 + $0x18] sm:$0xff]  ;;  %s1612_s8 = sshll.u32 %s2881_s7, 4  ;;  %s1613_s8 = int_to_ptr.hbm [resolvable:$true] %s1612_s8 }
  0x15   :  { %166 = vmatpush.bf16.msra.mxu0 %v1642_v11  ;;  %v74_v27 = vpack.c.bf16 %v59_v25, %v58_v24  ;;  %v75_v30 = vpack.c.bf16 %v61_v29, %v60_v28  ;;  %v62_v31 = vld [vmem:[%s2874_s0 + $0x20] sm:$0xff]  ;;  %v63_v32 = vld [vmem:[%s2874_s0 + $0x28] sm:$0xff]  ;;  %v64_v34 = vld [vmem:[%s2874_s0 + $0x30] sm:$0xff] }
  0x16   :  { %215 = vmatpush.bf16.msra.mxu1 %v1646_v12  ;;  %v76_v33 = vpack.c.bf16 %v63_v32, %v62_v31  ;;  %v65_v35 = vld [vmem:[%s2874_s0 + $0x38] sm:$0xff]  ;;  %v66_v37 = vld [vmem:[%s2874_s0 + $0x40] sm:$0xff]  ;;  %v67_v38 = vld [vmem:[%s2874_s0 + $0x48] sm:$0xff] }
  0x17   :  { %v77_v36 = vpack.c.bf16 %v65_v35, %v64_v34  ;;  %v78_v39 = vpack.c.bf16 %v67_v38, %v66_v37  ;;  %v68_v40 = vld [vmem:[%s2874_s0 + $0x50] sm:$0xff]  ;;  %v69_v41 = vld [vmem:[%s2874_s0 + $0x58] sm:$0xff]  ;;  %v70_v43 = vld [vmem:[%s2874_s0 + $0x60] sm:$0xff] }
  0x18   :  { %v79_v42 = vpack.c.bf16 %v69_v41, %v68_v40  ;;  %v71_v44 = vld [vmem:[%s2874_s0 + $0x68] sm:$0xff]  ;;  %v72_v46 = vld [vmem:[%s2874_s0 + $0x70] sm:$0xff]  ;;  %v73_v47 = vld [vmem:[%s2874_s0 + $0x78] sm:$0xff] }
  0x19   :  { %167 = vmatpush.bf16.msra.mxu0 %v1634_v17  ;;  %v80_v45 = vpack.c.bf16 %v71_v44, %v70_v43  ;;  %v81_v48 = vpack.c.bf16 %v73_v47, %v72_v46  ;;  %v90_v49 = vld [vmem:[#allocation3] ss:$4 sm:$0x3] }
  0x1a   :  { %216 = vmatpush.bf16.msra.mxu1 %v1638_v19  ;;  %v2076_v50 = vperm.slane %v90_v49, 0  ;;  %v2078_v51 = vperm.slane %v90_v49, 1 }
  0x1d   :  { %168 = vmatpush.bf16.msra.mxu0 %v1626_v23 }
  0x1e   :  { %217 = vmatpush.bf16.msra.mxu1 %v1630_v26 }
  0x20   :  { %1655 = vmatmul.msk.bf16.vlgmr.msra.gmra.mxu0 %vm136_vm0, %v74_v27 }
  0x21   :  { %1663 = vmatmul.msk.bf16.vlgmr.msra.gmra.mxu1 %vm136_vm0, %v74_v27 }
  0x30   :  { %1656 = vmatmul.msk.bf16.gmra.mxu0 %vm136_vm0, %v75_v30 }
  0x31   :  { %1664 = vmatmul.msk.bf16.gmra.mxu1 %vm136_vm0, %v75_v30 }
  0x40   :  { %1657 = vmatmul.msk.bf16.gmra.mxu0 %vm136_vm0, %v76_v33 }
  0x41   :  { %1665 = vmatmul.msk.bf16.gmra.mxu1 %vm136_vm0, %v76_v33 }
  0x50   :  { %1658 = vmatmul.msk.bf16.gmra.mxu0 %vm136_vm0, %v77_v36 }
  0x51   :  { %1666 = vmatmul.msk.bf16.gmra.mxu1 %vm136_vm0, %v77_v36 }
  0x60   :  { %1659 = vmatmul.msk.bf16.gmra.mxu0 %vm136_vm0, %v78_v39 }
  0x61   :  { %1667 = vmatmul.msk.bf16.gmra.mxu1 %vm136_vm0, %v78_v39 }
  0x70   :  { %1660 = vmatmul.msk.bf16.gmra.mxu0 %vm136_vm0, %v79_v42 }
  0x71   :  { %1668 = vmatmul.msk.bf16.gmra.mxu1 %vm136_vm0, %v79_v42 }
  0x80   :  { %1661 = vmatmul.msk.bf16.gmra.mxu0 %vm136_vm0, %v80_v45 }
  0x81   :  { %1669 = vmatmul.msk.bf16.gmra.mxu1 %vm136_vm0, %v80_v45 }
  0x90   :  { %1662 = vmatmul.msk.bf16.gmra.mxu0 %vm136_vm0, %v81_v48 }
  0x91   :  { %1670 = vmatmul.msk.bf16.gmra.mxu1 %vm136_vm0, %v81_v48 }
  0x9d   :  { %v170_v52 = vpop.f32.mrf.mxu0 }
  0x9e   :  { %v2081_v53 = vadd.f32 %v170_v52, %v2076_v50  ;;  %v219_v54 = vpop.f32.mrf.mxu1 }
  0x9f   :  { %v2084_v55 = vadd.f32 %v219_v54, %v2078_v51 }
  0xa0   :  { %v311_v56 = vmul.f32 %v2081_v53, %v2081_v53 }
  0xa1   :  { %v263_v57 = vadd.f32 %v2084_v55, %v2081_v53  ;;  %v312_v58 = vmul.f32 %v2084_v55, %v2084_v55 }
  0xa3   :  { %264 = vadd.xlane.f32.xlu0 %v263_v57  ;;  %v343_v59 = vadd.f32 %v312_v58, %v311_v56 }
  0xa5   :  { %344 = vadd.xlane.f32.xlu1 %v343_v59  ;;  %v172_v60 = vpop.f32.mrf.mxu0 }
  0xa6   :  { %v2093_v61 = vadd.f32 %v172_v60, %v2076_v50  ;;  %v221_v62 = vpop.f32.mrf.mxu1 }
  0xa7   :  { %v2096_v63 = vadd.f32 %v221_v62, %v2078_v51 }
  0xa8   :  { %v313_v0 = vmul.f32 %v2093_v61, %v2093_v61 }
  0xa9   :  { %v266_v1 = vadd.f32 %v2096_v63, %v2093_v61  ;;  %v314_v2 = vmul.f32 %v2096_v63, %v2096_v63 }
  0xab   :  { %267 = vadd.xlane.f32.xlu0 %v266_v1  ;;  %v346_v3 = vadd.f32 %v314_v2, %v313_v0 }
  0xad   :  { %347 = vadd.xlane.f32.xlu1 %v346_v3  ;;  %v175_v4 = vpop.f32.mrf.mxu0 }
  0xae   :  { %v2105_v5 = vadd.f32 %v175_v4, %v2076_v50  ;;  %v224_v6 = vpop.f32.mrf.mxu1 }
  0xaf   :  { %v2108_v7 = vadd.f32 %v224_v6, %v2078_v51 }
  0xb0   :  { %v315_v8 = vmul.f32 %v2105_v5, %v2105_v5 }
  0xb1   :  { %v269_v9 = vadd.f32 %v2108_v7, %v2105_v5  ;;  %v316_v10 = vmul.f32 %v2108_v7, %v2108_v7 }
  0xb3   :  { %270 = vadd.xlane.f32.xlu2 %v269_v9  ;;  %v349_v11 = vadd.f32 %v316_v10, %v315_v8 }
  0xb5   :  { %350 = vadd.xlane.f32.xlu0 %v349_v11  ;;  %v177_v12 = vpop.f32.mrf.mxu0 }
  0xb6   :  { %v2117_v13 = vadd.f32 %v177_v12, %v2076_v50  ;;  %v226_v14 = vpop.f32.mrf.mxu1 }
  0xb7   :  { %v2120_v15 = vadd.f32 %v226_v14, %v2078_v51 }
  0xb8   :  { %v317_v16 = vmul.f32 %v2117_v13, %v2117_v13 }
  0xb9   :  { %v272_v17 = vadd.f32 %v2120_v15, %v2117_v13  ;;  %v318_v18 = vmul.f32 %v2120_v15, %v2120_v15 }
  0xbb   :  { %273 = vadd.xlane.f32.xlu2 %v272_v17  ;;  %v352_v19 = vadd.f32 %v318_v18, %v317_v16 }
  0xbd   :  { %353 = vadd.xlane.f32.xlu1 %v352_v19  ;;  %v180_v20 = vpop.f32.mrf.mxu0 }
  0xbe   :  { %v2129_v21 = vadd.f32 %v180_v20, %v2076_v50  ;;  %v229_v22 = vpop.f32.mrf.mxu1 }
  0xbf   :  { %v2132_v23 = vadd.f32 %v229_v22, %v2078_v51 }
  0xc0   :  { %v319_v24 = vmul.f32 %v2129_v21, %v2129_v21 }
  0xc1   :  { %v275_v25 = vadd.f32 %v2132_v23, %v2129_v21  ;;  %v320_v26 = vmul.f32 %v2132_v23, %v2132_v23 }
  0xc3   :  { %276 = vadd.xlane.f32.xlu2 %v275_v25  ;;  %v355_v27 = vadd.f32 %v320_v26, %v319_v24 }
  0xc5   :  { %356 = vadd.xlane.f32.xlu1 %v355_v27  ;;  %v182_v28 = vpop.f32.mrf.mxu0 }
  0xc6   :  { %v2141_v29 = vadd.f32 %v182_v28, %v2076_v50  ;;  %v231_v30 = vpop.f32.mrf.mxu1 }
  0xc7   :  { %v2144_v31 = vadd.f32 %v231_v30, %v2078_v51 }
  0xc8   :  { %v321_v32 = vmul.f32 %v2141_v29, %v2141_v29 }
  0xc9   :  { %v278_v33 = vadd.f32 %v2144_v31, %v2141_v29  ;;  %v322_v34 = vmul.f32 %v2144_v31, %v2144_v31 }
  0xcb   :  { %279 = vadd.xlane.f32.xlu0 %v278_v33  ;;  %v358_v35 = vadd.f32 %v322_v34, %v321_v32 }
  0xcd   :  { %359 = vadd.xlane.f32.xlu2 %v358_v35  ;;  %v185_v36 = vpop.f32.mrf.mxu0 }
  0xce   :  { %v2153_v37 = vadd.f32 %v185_v36, %v2076_v50  ;;  %v234_v38 = vpop.f32.mrf.mxu1 }
  0xcf   :  { %v2156_v39 = vadd.f32 %v234_v38, %v2078_v51 }
  0xd0   :  { %v323_v40 = vmul.f32 %v2153_v37, %v2153_v37 }
  0xd1   :  { %v281_v41 = vadd.f32 %v2156_v39, %v2153_v37  ;;  %v324_v42 = vmul.f32 %v2156_v39, %v2156_v39 }
  0xd3   :  { %282 = vadd.xlane.f32.xlu0 %v281_v41  ;;  %v361_v43 = vadd.f32 %v324_v42, %v323_v40 }
  0xd5   :  { %362 = vadd.xlane.f32.xlu2 %v361_v43  ;;  %v187_v44 = vpop.f32.mrf.mxu0 }
  0xd6   :  { %v2165_v45 = vadd.f32 %v187_v44, %v2076_v50  ;;  %v236_v46 = vpop.f32.mrf.mxu1  ;;  %v1750_v44 = vld [vmem:[%s2877_s3 + $0x38] sm:$0xff] }
  0xd7   :  { %v2168_v47 = vadd.f32 %v236_v46, %v2078_v51  ;;  %v1758_v46 = vld [vmem:[%s2877_s3 + $0x78] sm:$0xff]  ;;  %947 = vmatpush.bf16.msra.mxu2 %v1750_v44 }
  0xd8   :  { %v325_v48 = vmul.f32 %v2165_v45, %v2165_v45  ;;  %996 = vmatpush.bf16.msra.mxu3 %v1758_v46 }
  0xd9   :  { %v284_v49 = vadd.f32 %v2168_v47, %v2165_v45  ;;  %v326_v52 = vmul.f32 %v2168_v47, %v2168_v47 }
  0xdb   :  { %285 = vadd.xlane.f32.xlu1 %v284_v49  ;;  %v364_v54 = vadd.f32 %v326_v52, %v325_v48 }
  0xdd   :  { %365 = vadd.xlane.f32.xlu0 %v364_v54  ;;  %v190_v56 = vpop.f32.mrf.mxu0 }
  0xde   :  { %v2177_v57 = vadd.f32 %v190_v56, %v2076_v50  ;;  %v239_v58 = vpop.f32.mrf.mxu1  ;;  %v1749_v56 = vld [vmem:[%s2877_s3 + $0x30] sm:$0xff] }
  0xdf   :  { %v2180_v59 = vadd.f32 %v239_v58, %v2078_v51  ;;  %v1757_v58 = vld [vmem:[%s2877_s3 + $0x70] sm:$0xff]  ;;  %948 = vmatpush.bf16.msra.mxu2 %v1749_v56  ;;  %v1752_v56 = vld [vmem:[%s2877_s3 + $0x48] sm:$0xff] }
  0xe0   :  { %v327_v60 = vmul.f32 %v2177_v57, %v2177_v57  ;;  %997 = vmatpush.bf16.msra.mxu3 %v1757_v58 }
  0xe1   :  { %v287_v62 = vadd.f32 %v2180_v59, %v2177_v57  ;;  %v328_v0 = vmul.f32 %v2180_v59, %v2180_v59 }
  0xe3   :  { %288 = vadd.xlane.f32.xlu1 %v287_v62  ;;  %v367_v1 = vadd.f32 %v328_v0, %v327_v60 }
  0xe5   :  { %368 = vadd.xlane.f32.xlu0 %v367_v1  ;;  %v192_v2 = vpop.f32.mrf.mxu0 }
  0xe6   :  { %v2189_v3 = vadd.f32 %v192_v2, %v2076_v50  ;;  %v241_v4 = vpop.f32.mrf.mxu1  ;;  %v1748_v2 = vld [vmem:[%s2877_s3 + $0x28] sm:$0xff] }
  0xe7   :  { %v2192_v6 = vadd.f32 %v241_v4, %v2078_v51  ;;  %v1756_v4 = vld [vmem:[%s2877_s3 + $0x68] sm:$0xff]  ;;  %949 = vmatpush.bf16.msra.mxu2 %v1748_v2  ;;  %v1751_v2 = vld [vmem:[%s2877_s3 + $0x40] sm:$0xff] }
  0xe8   :  { %v329_v8 = vmul.f32 %v2189_v3, %v2189_v3  ;;  %998 = vmatpush.bf16.msra.mxu3 %v1756_v4 }
  0xe9   :  { %v290_v9 = vadd.f32 %v2192_v6, %v2189_v3  ;;  %v330_v10 = vmul.f32 %v2192_v6, %v2192_v6 }
  0xeb   :  { %291 = vadd.xlane.f32.xlu2 %v290_v9  ;;  %v370_v11 = vadd.f32 %v330_v10, %v329_v8 }
  0xed   :  { %371 = vadd.xlane.f32.xlu1 %v370_v11  ;;  %v195_v12 = vpop.f32.mrf.mxu0 }
  0xee   :  { %v2201_v14 = vadd.f32 %v195_v12, %v2076_v50  ;;  %v244_v16 = vpop.f32.mrf.mxu1  ;;  %v1747_v12 = vld [vmem:[%s2877_s3 + $0x20] sm:$0xff] }
  0xef   :  { %v2204_v17 = vadd.f32 %v244_v16, %v2078_v51  ;;  %v1755_v16 = vld [vmem:[%s2877_s3 + $0x60] sm:$0xff]  ;;  %950 = vmatpush.bf16.msra.mxu2 %v1747_v12 }
  0xf0   :  { %v331_v18 = vmul.f32 %v2201_v14, %v2201_v14  ;;  %999 = vmatpush.bf16.msra.mxu3 %v1755_v16 }
  0xf1   :  { %v293_v19 = vadd.f32 %v2204_v17, %v2201_v14  ;;  %v332_v20 = vmul.f32 %v2204_v17, %v2204_v17 }
  0xf3   :  { %294 = vadd.xlane.f32.xlu2 %v293_v19  ;;  %v373_v22 = vadd.f32 %v332_v20, %v331_v18 }
  0xf5   :  { %374 = vadd.xlane.f32.xlu1 %v373_v22  ;;  %v197_v24 = vpop.f32.mrf.mxu0 }
  0xf6   :  { %v2213_v25 = vadd.f32 %v197_v24, %v2076_v50  ;;  %v246_v26 = vpop.f32.mrf.mxu1  ;;  %v1746_v24 = vld [vmem:[%s2877_s3 + $0x18] sm:$0xff] }
  0xf7   :  { %v2216_v27 = vadd.f32 %v246_v26, %v2078_v51  ;;  %v1754_v26 = vld [vmem:[%s2877_s3 + $0x58] sm:$0xff]  ;;  %951 = vmatpush.bf16.msra.mxu2 %v1746_v24 }
  0xf8   :  { %v333_v28 = vmul.f32 %v2213_v25, %v2213_v25  ;;  %1000 = vmatpush.bf16.msra.mxu3 %v1754_v26 }
  0xf9   :  { %v296_v30 = vadd.f32 %v2216_v27, %v2213_v25  ;;  %v334_v32 = vmul.f32 %v2216_v27, %v2216_v27 }
  0xfb   :  { %297 = vadd.xlane.f32.xlu0 %v296_v30  ;;  %v376_v33 = vadd.f32 %v334_v32, %v333_v28 }
  0xfd   :  { %377 = vadd.xlane.f32.xlu2 %v376_v33  ;;  %v200_v34 = vpop.f32.mrf.mxu0 }
  0xfe   :  { %v2225_v35 = vadd.f32 %v200_v34, %v2076_v50  ;;  %v249_v36 = vpop.f32.mrf.mxu1 }
  0xff   :  { %v2228_v38 = vadd.f32 %v249_v36, %v2078_v51 }
 0x100   :  { %v335_v40 = vmul.f32 %v2225_v35, %v2225_v35 }
 0x101   :  { %v299_v41 = vadd.f32 %v2228_v38, %v2225_v35  ;;  %v336_v42 = vmul.f32 %v2228_v38, %v2228_v38 }
 0x103   :  { %300 = vadd.xlane.f32.xlu0 %v299_v41  ;;  %v379_v43 = vadd.f32 %v336_v42, %v335_v40  ;;  %v1745_v40 = vld [vmem:[%s2877_s3 + $0x10] sm:$0xff] }
 0x104   :  { %v1753_v41 = vld [vmem:[%s2877_s3 + $0x50] sm:$0xff]  ;;  %952 = vmatpush.bf16.msra.mxu2 %v1745_v40 }
 0x105   :  { %380 = vadd.xlane.f32.xlu2 %v379_v43  ;;  %v202_v48 = vpop.f32.mrf.mxu0  ;;  %1001 = vmatpush.bf16.msra.mxu3 %v1753_v41 }
 0x106   :  { %v2243_v49 = vadd.f32 %v202_v48, %v2076_v50  ;;  %v251_v52 = vpop.f32.mrf.mxu1 }
 0x107   :  { %v2246_v54 = vadd.f32 %v251_v52, %v2078_v51  ;;  %v1744_v52 = vld [vmem:[%s2877_s3 + $0x8] sm:$0xff] }
 0x108   :  { %v337_v60 = vmul.f32 %v2243_v49, %v2243_v49  ;;  %953 = vmatpush.bf16.msra.mxu2 %v1744_v52 }
 0x109   :  { %v302_v62 = vadd.f32 %v2246_v54, %v2243_v49  ;;  %v338_v0 = vmul.f32 %v2246_v54, %v2246_v54  ;;  %1002 = vmatpush.bf16.msra.mxu3 %v1752_v56  ;;  %v260_v56 = vld [vmem:[#allocation3 + $0x1] ss:$4 sm:$0x3] }
 0x10b   :  { %303 = vadd.xlane.f32.xlu1 %v302_v62  ;;  %v382_v1 = vadd.f32 %v338_v0, %v337_v60 }
 0x10d   :  { %383 = vadd.xlane.f32.xlu0 %v382_v1  ;;  %v205_v8 = vpop.f32.mrf.mxu0  ;;  %v1743_v1 = vld [vmem:[%s2877_s3] sm:$0xff]  ;;  %1003 = vmatpush.bf16.msra.mxu3 %v1751_v2 }
 0x10e   :  { %v2267_v9 = vadd.f32 %v205_v8, %v2076_v50  ;;  %v254_v10 = vpop.f32.mrf.mxu1  ;;  %954 = vmatpush.bf16.msra.mxu2 %v1743_v1 }
 0x10f   :  { %v2270_v11 = vadd.f32 %v254_v10, %v2078_v51 }
 0x110   :  { %v339_v18 = vmul.f32 %v2267_v9, %v2267_v9 }
 0x111   :  { %v305_v19 = vadd.f32 %v2270_v11, %v2267_v9  ;;  %v340_v20 = vmul.f32 %v2270_v11, %v2270_v11 }
 0x113   :  { %306 = vadd.xlane.f32.xlu1 %v305_v19  ;;  %v385_v22 = vadd.f32 %v340_v20, %v339_v18 }
 0x115   :  { %386 = vadd.xlane.f32.xlu0 %v385_v22  ;;  %v207_v28 = vpop.f32.mrf.mxu0 }
 0x116   :  { %v2291_v30 = vadd.f32 %v207_v28, %v2076_v50  ;;  %v256_v32 = vpop.f32.mrf.mxu1  ;;  %v265_v33 = vpop.xlane.xlu0 %264 }
 0x117   :  { %v2294_v34 = vadd.f32 %v256_v32, %v2078_v51  ;;  %v2296_v36 = vmul.f32 0.005, %v265_v33 }
 0x118   :  { %v345_v42 = vpop.xlane.xlu1 %344  ;;  %v341_v50 = vmul.f32 %v2291_v30, %v2291_v30 }
 0x119   :  { %v407_v43 = vmul.f32 0.005, %v345_v42  ;;  %v423_v44 = vmul.f32 %v2296_v36, %v2296_v36  ;;  %v308_v51 = vadd.f32 %v2294_v34, %v2291_v30  ;;  %v342_v46 = vmul.f32 %v2294_v34, %v2294_v34 }
 0x11a   :  { %v631_v2 = vsub.f32 %v2081_v53, %v2296_v36 }
 0x11b   :  { %v439_v48 = vsub.f32 %v407_v43, %v423_v44  ;;  %309 = vadd.xlane.f32.xlu2 %v308_v51  ;;  %v388_v58 = vadd.f32 %v342_v46, %v341_v50 }
 0x11d   :  { %v455_v60 = vadd.f32 1e-05, %v439_v48  ;;  %389 = vadd.xlane.f32.xlu1 %v388_v58 }
 0x11e   :  { %v268_v62 = vpop.xlane.xlu0 %267 }
 0x11f   :  { %1769 = vrsqrt.f32 %v455_v60  ;;  %v2318_v0 = vmul.f32 0.005, %v268_v62  ;;  %vm477_vm2 = vweird.f32 %v455_v60 }
 0x120   :  { %v348_v4 = vpop.xlane.xlu1 %347 }
 0x121   :  { %v408_v8 = vmul.f32 0.005, %v348_v4  ;;  %v424_v10 = vmul.f32 %v2318_v0, %v2318_v0 }
 0x123   :  { %v440_v12 = vsub.f32 %v408_v8, %v424_v10  ;;  %v2341_v10 = vperm.slane %v260_v56, 0 }
 0x125   :  { %v1770_v16 = vpop.eup %1769  ;;  %v456_v18 = vadd.f32 1e-05, %v440_v12 }
 0x126   :  { %v472_v19 = vmul.f32 %v1770_v16, %v455_v60  ;;  %v271_v20 = vpop.xlane.xlu2 %270  ;;  %vm478_vm1 = vweird.f32 %v1770_v16  ;;  %v632_v60 = vsub.f32 %v2084_v55, %v2296_v36 }
 0x127   :  { %1771 = vrsqrt.f32 %v456_v18  ;;  %v2328_v22 = vmul.f32 0.005, %v271_v20  ;;  %vm479_vm3 = vmor %vm477_vm2, %vm478_vm1  ;;  %vm487_vm5 = vweird.f32 %v456_v18 }
 0x128   :  { %v473_v24 = vmul.f32 %v1770_v16, %v472_v19  ;;  %v351_v26 = vpop.xlane.xlu0 %350  ;;  %v262_v19 = vld [vmem:[#allocation3 + $0x2] ss:$4 sm:$0x3] }
 0x129   :  { %v425_v28 = vmul.f32 %v2328_v22, %v2328_v22  ;;  %v409_v32 = vmul.f32 0.005, %v351_v26  ;;  %v2355_v36 = vperm.slane %v262_v19, 0 }
 0x12a   :  { %v474_v33 = vmul.f32 0.5, %v473_v24 }
 0x12b   :  { %v441_v40 = vsub.f32 %v409_v32, %v425_v28  ;;  %v2347_v28 = vperm.slane %v260_v56, 1 }
 0x12c   :  { %v475_v41 = vsub.f32 1.5, %v474_v33 }
 0x12d   :  { %v1772_v42 = vpop.eup %1771  ;;  %v2332_v50 = vadd.f32 1e-05, %v441_v40  ;;  %v633_v40 = vsub.f32 %v2093_v61, %v2318_v0  ;;  %v2362_v61 = vperm.slane %v262_v19, 1 }
 0x12e   :  { %v476_v43 = vmul.f32 %v1770_v16, %v475_v41  ;;  %v482_v44 = vmul.f32 %v1772_v42, %v456_v18  ;;  %v274_v51 = vpop.xlane.xlu2 %273  ;;  %vm488_vm4 = vweird.f32 %v1772_v42  ;;  %v634_v41 = vsub.f32 %v2096_v63, %v2318_v0 }
 0x12f   :  { %1773 = vrsqrt.f32 %v2332_v50  ;;  %v2335_v46 = vmul.f32 0.005, %v274_v51  ;;  %vm489_vm6 = vmor %vm487_vm5, %vm488_vm4  ;;  %vm497_vm8 = vweird.f32 %v2332_v50 }
 0x130   :  { %v483_v48 = vmul.f32 %v1772_v42, %v482_v44  ;;  %v354_v52 = vpop.xlane.xlu1 %353  ;;  %v480_v1 = vsel %vm479_vm3, %v1770_v16, %v476_v43 }
 0x131   :  { %v426_v58 = vmul.f32 %v2335_v46, %v2335_v46  ;;  %v410_v62 = vmul.f32 0.005, %v354_v52  ;;  %v663_v20 = vmul.f32 %v631_v2, %v480_v1  ;;  %v664_v33 = vmul.f32 %v632_v60, %v480_v1 }
 0x132   :  { %v484_v4 = vmul.f32 0.5, %v483_v48 }
 0x133   :  { %v442_v8 = vsub.f32 %v410_v62, %v426_v58  ;;  %v700_v51 = vmul.f32 %v2341_v10, %v663_v20  ;;  %v701_v1 = vmul.f32 %v2347_v28, %v664_v33 }
 0x134   :  { %v485_v12 = vsub.f32 1.5, %v484_v4 }
 0x135   :  { %v1774_v24 = vpop.eup %1773  ;;  %v2345_v26 = vadd.f32 1e-05, %v442_v8  ;;  %v737_v0 = vadd.f32 %v2355_v36, %v700_v51 }
 0x136   :  { %v486_v16 = vmul.f32 %v1772_v42, %v485_v12  ;;  %v492_v53 = vmul.f32 %v1774_v24, %v2332_v50  ;;  %v277_v32 = vpop.xlane.xlu2 %276  ;;  %vm498_vm7 = vweird.f32 %v1774_v24 }
 0x137   :  { %1775 = vrsqrt.f32 %v2345_v26  ;;  %v2353_v55 = vmul.f32 0.005, %v277_v32  ;;  %vm499_vm9 = vmor %vm497_vm8, %vm498_vm7  ;;  %vm507_vm11 = vweird.f32 %v2345_v26 }
 0x138   :  { %v493_v43 = vmul.f32 %v1774_v24, %v492_v53  ;;  %v357_v44 = vpop.xlane.xlu1 %356  ;;  %v490_v18 = vsel %vm489_vm6, %v1772_v42, %v486_v16  ;;  %v738_v53 = vadd.f32 %v2362_v61, %v701_v1  ;;  %v636_v1 = vsub.f32 %v2108_v7, %v2328_v22 }
 0x139   :  { %v427_v48 = vmul.f32 %v2353_v55, %v2353_v55  ;;  %v411_v52 = vmul.f32 0.005, %v357_v44  ;;  %v665_v58 = vmul.f32 %v633_v40, %v490_v18  ;;  %v666_v62 = vmul.f32 %v634_v41, %v490_v18 }
 0x13a   :  { %v494_v56 = vmul.f32 0.5, %v493_v43  ;;  %v769_v43 = vmax.f32 %v737_v0, 0.0  ;;  %v635_v18 = vsub.f32 %v2105_v5, %v2328_v22  ;;  %v637_v7 = vsub.f32 %v2117_v13, %v2335_v46 }
 0x13b   :  { %v443_v2 = vsub.f32 %v411_v52, %v427_v48  ;;  %v702_v63 = vmul.f32 %v2341_v10, %v665_v58  ;;  %v703_v42 = vmul.f32 %v2347_v28, %v666_v62  ;;  %v770_v58 = vmax.f32 %v738_v53, 0.0 }
 0x13c   :  { %v495_v4 = vsub.f32 1.5, %v494_v56 }
 0x13d   :  { %v1776_v8 = vpop.eup %1775  ;;  %v2368_v60 = vadd.f32 1e-05, %v443_v2  ;;  %v739_v16 = vadd.f32 %v2355_v36, %v702_v63  ;;  %v740_v33 = vadd.f32 %v2362_v61, %v703_v42 }
 0x13e   :  { %v496_v12 = vmul.f32 %v1774_v24, %v495_v4  ;;  %v502_v19 = vmul.f32 %v1776_v8, %v2345_v26  ;;  %v280_v20 = vpop.xlane.xlu0 %279  ;;  %vm508_vm10 = vweird.f32 %v1776_v8 }
 0x13f   :  { %1777 = vrsqrt.f32 %v2368_v60  ;;  %v2375_v32 = vmul.f32 0.005, %v280_v20  ;;  %v771_v44 = vmax.f32 %v739_v16, 0.0  ;;  %v772_v62 = vmax.f32 %v740_v33, 0.0  ;;  %vm509_vm12 = vmor %vm507_vm11, %vm508_vm10 }
 0x140   :  { %v503_v40 = vmul.f32 %v1776_v8, %v502_v19  ;;  %v360_v41 = vpop.xlane.xlu2 %359  ;;  %v500_v52 = vsel %vm499_vm9, %v1774_v24, %v496_v12  ;;  %v638_v16 = vsub.f32 %v2120_v15, %v2335_v46  ;;  %vm517_vm14 = vweird.f32 %v2368_v60 }
 0x141   :  { %v412_v51 = vmul.f32 0.005, %v360_v41  ;;  %v428_v48 = vmul.f32 %v2375_v32, %v2375_v32  ;;  %v801_v56 = vpack.c.bf16 %v771_v44, %v769_v43  ;;  %v802_v63 = vpack.c.bf16 %v772_v62, %v770_v58 }
 0x142   :  { %v504_v50 = vmul.f32 0.5, %v503_v40  ;;  %v667_v0 = vmul.f32 %v635_v18, %v500_v52  ;;  %v668_v20 = vmul.f32 %v636_v1, %v500_v52 }
 0x143   :  { %v444_v2 = vsub.f32 %v412_v51, %v428_v48  ;;  %955 = vmatmul.bf16.vlgmr.msra.gmra.mxu2 %v801_v56  ;;  %1004 = vmatmul.bf16.vlgmr.msra.gmra.mxu3 %v802_v63 }
 0x144   :  { %v505_v4 = vsub.f32 1.5, %v504_v50  ;;  %v704_v26 = vmul.f32 %v2341_v10, %v667_v0  ;;  %v705_v51 = vmul.f32 %v2347_v28, %v668_v20 }
 0x145   :  { %v1778_v42 = vpop.eup %1777  ;;  %v2384_v5 = vadd.f32 1e-05, %v444_v2 }
 0x146   :  { %v506_v19 = vmul.f32 %v1776_v8, %v505_v4  ;;  %v512_v24 = vmul.f32 %v1778_v42, %v2368_v60  ;;  %v283_v12 = vpop.xlane.xlu0 %282  ;;  %v741_v15 = vadd.f32 %v2355_v36, %v704_v26  ;;  %vm518_vm13 = vweird.f32 %v1778_v42 }
 0x147   :  { %1779 = vrsqrt.f32 %v2384_v5  ;;  %v2391_v22 = vmul.f32 0.005, %v283_v12  ;;  %v742_v4 = vadd.f32 %v2362_v61, %v705_v51  ;;  %vm519_vm15 = vmor %vm517_vm14, %vm518_vm13  ;;  %vm527_vm1 = vweird.f32 %v2384_v5 }
 0x148   :  { %v513_v53 = vmul.f32 %v1778_v42, %v512_v24  ;;  %v363_v33 = vpop.xlane.xlu2 %362  ;;  %v510_v40 = vsel %vm509_vm12, %v1776_v8, %v506_v19  ;;  %v773_v12 = vmax.f32 %v741_v15, 0.0 }
 0x149   :  { %v413_v41 = vmul.f32 0.005, %v363_v33  ;;  %v429_v43 = vmul.f32 %v2391_v22, %v2391_v22  ;;  %v669_v18 = vmul.f32 %v637_v7, %v510_v40  ;;  %v670_v13 = vmul.f32 %v638_v16, %v510_v40 }
 0x14a   :  { %v514_v44 = vmul.f32 0.5, %v513_v53  ;;  %v639_v7 = vsub.f32 %v2129_v21, %v2353_v55  ;;  %v774_v26 = vmax.f32 %v742_v4, 0.0 }
 0x14b   :  { %v445_v48 = vsub.f32 %v413_v41, %v429_v43  ;;  %v706_v50 = vmul.f32 %v2341_v10, %v669_v18  ;;  %v707_v46 = vmul.f32 %v2347_v28, %v670_v13  ;;  %v640_v43 = vsub.f32 %v2132_v23, %v2353_v55 }
 0x14c   :  { %v515_v52 = vsub.f32 1.5, %v514_v44  ;;  %v641_v23 = vsub.f32 %v2141_v29, %v2375_v32 }
 0x14d   :  { %v1780_v8 = vpop.eup %1779  ;;  %v2402_v56 = vadd.f32 1e-05, %v445_v48  ;;  %v743_v2 = vadd.f32 %v2355_v36, %v706_v50  ;;  %v744_v0 = vadd.f32 %v2362_v61, %v707_v46  ;;  %v642_v46 = vsub.f32 %v2144_v31, %v2375_v32 }
 0x14e   :  { %v516_v58 = vmul.f32 %v1778_v42, %v515_v52  ;;  %v522_v62 = vmul.f32 %v1780_v8, %v2384_v5  ;;  %v286_v1 = vpop.xlane.xlu1 %285  ;;  %vm528_vm0 = vweird.f32 %v1780_v8 }
 0x14f   :  { %1781 = vrsqrt.f32 %v2402_v56  ;;  %v2409_v63 = vmul.f32 0.005, %v286_v1  ;;  %v775_v20 = vmax.f32 %v743_v2, 0.0  ;;  %v776_v41 = vmax.f32 %v744_v0, 0.0  ;;  %vm529_vm2 = vmor %vm527_vm1, %vm528_vm0 }
 0x150   :  { %v523_v19 = vmul.f32 %v1780_v8, %v522_v62  ;;  %v366_v24 = vpop.xlane.xlu0 %365  ;;  %v520_v33 = vsel %vm519_vm15, %v1778_v42, %v516_v58  ;;  %vm537_vm4 = vweird.f32 %v2402_v56 }
 0x151   :  { %v430_v16 = vmul.f32 %v2409_v63, %v2409_v63  ;;  %v414_v53 = vmul.f32 0.005, %v366_v24  ;;  %v803_v40 = vpack.c.bf16 %v775_v20, %v773_v12  ;;  %v804_v13 = vpack.c.bf16 %v776_v41, %v774_v26 }
 0x152   :  { %v524_v60 = vmul.f32 0.5, %v523_v19  ;;  %v671_v51 = vmul.f32 %v639_v7, %v520_v33  ;;  %v672_v15 = vmul.f32 %v640_v43, %v520_v33 }
 0x153   :  { %v446_v44 = vsub.f32 %v414_v53, %v430_v16  ;;  %960 = vmatmul.bf16.gmra.mxu2 %v803_v40  ;;  %1009 = vmatmul.bf16.gmra.mxu3 %v804_v13 }
 0x154   :  { %v525_v18 = vsub.f32 1.5, %v524_v60  ;;  %v708_v5 = vmul.f32 %v2341_v10, %v671_v51  ;;  %v709_v24 = vmul.f32 %v2347_v28, %v672_v15 }
 0x155   :  { %v1782_v48 = vpop.eup %1781  ;;  %v2418_v21 = vadd.f32 1e-05, %v446_v44 }
 0x156   :  { %v526_v52 = vmul.f32 %v1780_v8, %v525_v18  ;;  %v532_v42 = vmul.f32 %v1782_v48, %v2402_v56  ;;  %v289_v50 = vpop.xlane.xlu1 %288  ;;  %v745_v31 = vadd.f32 %v2355_v36, %v708_v5  ;;  %vm538_vm3 = vweird.f32 %v1782_v48 }
 0x157   :  { %1783 = vrsqrt.f32 %v2418_v21  ;;  %v2425_v55 = vmul.f32 0.005, %v289_v50  ;;  %v746_v26 = vadd.f32 %v2362_v61, %v709_v24  ;;  %vm539_vm5 = vmor %vm537_vm4, %vm538_vm3  ;;  %vm547_vm7 = vweird.f32 %v2418_v21 }
 0x158   :  { %v533_v58 = vmul.f32 %v1782_v48, %v532_v42  ;;  %v369_v62 = vpop.xlane.xlu0 %368  ;;  %v530_v1 = vsel %vm529_vm2, %v1780_v8, %v526_v52  ;;  %v777_v13 = vmax.f32 %v745_v31, 0.0  ;;  %v643_v52 = vsub.f32 %v2153_v37, %v2391_v22 }
 0x159   :  { %v431_v2 = vmul.f32 %v2425_v55, %v2425_v55  ;;  %v415_v4 = vmul.f32 0.005, %v369_v62  ;;  %v673_v19 = vmul.f32 %v641_v23, %v530_v1  ;;  %v674_v29 = vmul.f32 %v642_v46, %v530_v1 }
 0x15a   :  { %v534_v0 = vmul.f32 0.5, %v533_v58  ;;  %v778_v46 = vmax.f32 %v746_v26, 0.0  ;;  %v644_v62 = vsub.f32 %v2156_v39, %v2391_v22  ;;  %v645_v39 = vsub.f32 %v2165_v45, %v2409_v63 }
 0x15b   :  { %v447_v12 = vsub.f32 %v415_v4, %v431_v2  ;;  %v710_v7 = vmul.f32 %v2341_v10, %v673_v19  ;;  %v711_v32 = vmul.f32 %v2347_v28, %v674_v29 }
 0x15c   :  { %v535_v20 = vsub.f32 1.5, %v534_v0 }
 0x15d   :  { %v1784_v8 = vpop.eup %1783  ;;  %v2436_v16 = vadd.f32 1e-05, %v447_v12  ;;  %v747_v40 = vadd.f32 %v2355_v36, %v710_v7  ;;  %v748_v43 = vadd.f32 %v2362_v61, %v711_v32  ;;  %v646_v12 = vsub.f32 %v2168_v47, %v2409_v63 }
 0x15e   :  { %v536_v53 = vmul.f32 %v1782_v48, %v535_v20  ;;  %v542_v33 = vmul.f32 %v1784_v8, %v2418_v21  ;;  %v292_v60 = vpop.xlane.xlu2 %291  ;;  %vm548_vm6 = vweird.f32 %v1784_v8 }
 0x15f   :  { %1785 = vrsqrt.f32 %v2436_v16  ;;  %v2443_v41 = vmul.f32 0.005, %v292_v60  ;;  %v779_v51 = vmax.f32 %v747_v40, 0.0  ;;  %v780_v58 = vmax.f32 %v748_v43, 0.0  ;;  %vm549_vm8 = vmor %vm547_vm7, %vm548_vm6 }
 0x160   :  { %v543_v44 = vmul.f32 %v1784_v8, %v542_v33  ;;  %v372_v18 = vpop.xlane.xlu1 %371  ;;  %v540_v15 = vsel %vm539_vm5, %v1782_v48, %v536_v53  ;;  %vm557_vm10 = vweird.f32 %v2436_v16 }
 0x161   :  { %v432_v42 = vmul.f32 %v2443_v41, %v2443_v41  ;;  %v416_v50 = vmul.f32 0.005, %v372_v18  ;;  %v805_v23 = vpack.c.bf16 %v779_v51, %v777_v13  ;;  %v806_v2 = vpack.c.bf16 %v780_v58, %v778_v46 }
 0x162   :  { %v544_v56 = vmul.f32 0.5, %v543_v44  ;;  %v675_v4 = vmul.f32 %v643_v52, %v540_v15  ;;  %v676_v24 = vmul.f32 %v644_v62, %v540_v15 }
 0x163   :  { %v448_v1 = vsub.f32 %v416_v50, %v432_v42  ;;  %965 = vmatmul.bf16.gmra.mxu2 %v805_v23  ;;  %1014 = vmatmul.bf16.gmra.mxu3 %v806_v2 }
 0x164   :  { %v545_v5 = vsub.f32 1.5, %v544_v56  ;;  %v712_v21 = vmul.f32 %v2341_v10, %v675_v4  ;;  %v713_v40 = vmul.f32 %v2347_v28, %v676_v24  ;;  %v648_v24 = vsub.f32 %v2180_v59, %v2425_v55 }
 0x165   :  { %v1786_v0 = vpop.eup %1785  ;;  %v2452_v37 = vadd.f32 1e-05, %v448_v1  ;;  %v647_v1 = vsub.f32 %v2177_v57, %v2425_v55  ;;  %v649_v59 = vsub.f32 %v2189_v3, %v2443_v41 }
 0x166   :  { %v546_v19 = vmul.f32 %v1784_v8, %v545_v5  ;;  %v552_v48 = vmul.f32 %v1786_v0, %v2436_v16  ;;  %v295_v29 = vpop.xlane.xlu2 %294  ;;  %v749_v47 = vadd.f32 %v2355_v36, %v712_v21  ;;  %vm558_vm9 = vweird.f32 %v1786_v0 }
 0x167   :  { %1787 = vrsqrt.f32 %v2452_v37  ;;  %v2459_v22 = vmul.f32 0.005, %v295_v29  ;;  %v750_v50 = vadd.f32 %v2362_v61, %v713_v40  ;;  %vm559_vm11 = vmor %vm557_vm10, %vm558_vm9  ;;  %vm567_vm13 = vweird.f32 %v2452_v37 }
 0x168   :  { %v553_v20 = vmul.f32 %v1786_v0, %v552_v48  ;;  %v375_v7 = vpop.xlane.xlu1 %374  ;;  %v550_v31 = vsel %vm549_vm8, %v1784_v8, %v546_v19  ;;  %v781_v58 = vmax.f32 %v749_v47, 0.0 }
 0x169   :  { %v433_v32 = vmul.f32 %v2459_v22, %v2459_v22  ;;  %v417_v53 = vmul.f32 0.005, %v375_v7  ;;  %v677_v60 = vmul.f32 %v645_v39, %v550_v31  ;;  %v678_v45 = vmul.f32 %v646_v12, %v550_v31 }
 0x16a   :  { %v554_v33 = vmul.f32 0.5, %v553_v20  ;;  %v782_v48 = vmax.f32 %v750_v50, 0.0 }
 0x16b   :  { %v449_v26 = vsub.f32 %v417_v53, %v433_v32  ;;  %v714_v44 = vmul.f32 %v2341_v10, %v677_v60  ;;  %v715_v63 = vmul.f32 %v2347_v28, %v678_v45 }
 0x16c   :  { %v555_v43 = vsub.f32 1.5, %v554_v33  ;;  %v650_v33 = vsub.f32 %v2192_v6, %v2443_v41 }
 0x16d   :  { %v1788_v8 = vpop.eup %1787  ;;  %v2470_v18 = vadd.f32 1e-05, %v449_v26  ;;  %v751_v42 = vadd.f32 %v2355_v36, %v714_v44  ;;  %v752_v56 = vadd.f32 %v2362_v61, %v715_v63 }
 0x16e   :  { %v556_v13 = vmul.f32 %v1786_v0, %v555_v43  ;;  %v562_v51 = vmul.f32 %v1788_v8, %v2452_v37  ;;  %v298_v52 = vpop.xlane.xlu0 %297  ;;  %vm568_vm12 = vweird.f32 %v1788_v8 }
 0x16f   :  { %1789 = vrsqrt.f32 %v2470_v18  ;;  %v2477_v15 = vmul.f32 0.005, %v298_v52  ;;  %v783_v62 = vmax.f32 %v751_v42, 0.0  ;;  %v784_v29 = vmax.f32 %v752_v56, 0.0  ;;  %vm569_vm14 = vmor %vm567_vm13, %vm568_vm12 }
 0x170   :  { %v563_v23 = vmul.f32 %v1788_v8, %v562_v51  ;;  %v378_v46 = vpop.xlane.xlu2 %377  ;;  %v560_v4 = vsel %vm559_vm11, %v1786_v0, %v556_v13  ;;  %vm577_vm0 = vweird.f32 %v2470_v18 }
 0x171   :  { %v418_v5 = vmul.f32 0.005, %v378_v46  ;;  %v434_v2 = vmul.f32 %v2477_v15, %v2477_v15  ;;  %v807_v19 = vpack.c.bf16 %v783_v62, %v781_v58  ;;  %v808_v20 = vpack.c.bf16 %v784_v29, %v782_v48 }
 0x172   :  { %v564_v16 = vmul.f32 0.5, %v563_v23  ;;  %v679_v7 = vmul.f32 %v647_v1, %v560_v4  ;;  %v680_v21 = vmul.f32 %v648_v24, %v560_v4 }
 0x173   :  { %v450_v39 = vsub.f32 %v418_v5, %v434_v2  ;;  %970 = vmatmul.bf16.gmra.mxu2 %v807_v19  ;;  %1019 = vmatmul.bf16.gmra.mxu3 %v808_v20 }
 0x174   :  { %v565_v12 = vsub.f32 1.5, %v564_v16  ;;  %v716_v37 = vmul.f32 %v2341_v10, %v679_v7  ;;  %v717_v44 = vmul.f32 %v2347_v28, %v680_v21  ;;  %v651_v7 = vsub.f32 %v2201_v14, %v2459_v22 }
 0x175   :  { %v1790_v31 = vpop.eup %1789  ;;  %v2486_v57 = vadd.f32 1e-05, %v450_v39 }
 0x176   :  { %v566_v32 = vmul.f32 %v1788_v8, %v565_v12  ;;  %v572_v0 = vmul.f32 %v1790_v31, %v2470_v18  ;;  %v301_v53 = vpop.xlane.xlu0 %300  ;;  %v753_v6 = vadd.f32 %v2355_v36, %v716_v37  ;;  %v754_v50 = vadd.f32 %v2362_v61, %v717_v44 }
 0x177   :  { %1791 = vrsqrt.f32 %v2486_v57  ;;  %v2493_v55 = vmul.f32 0.005, %v301_v53  ;;  %vm578_vm15 = vweird.f32 %v1790_v31  ;;  %v652_v18 = vsub.f32 %v2204_v17, %v2459_v22 }
 0x178   :  { %v573_v60 = vmul.f32 %v1790_v31, %v572_v0  ;;  %v381_v45 = vpop.xlane.xlu2 %380  ;;  %v570_v40 = vsel %vm569_vm14, %v1788_v8, %v566_v32  ;;  %v785_v4 = vmax.f32 %v753_v6, 0.0  ;;  %vm579_vm1 = vmor %vm577_vm0, %vm578_vm15  ;;  %v786_v29 = vmax.f32 %v754_v50, 0.0 }
 0x179   :  { %v419_v26 = vmul.f32 0.005, %v381_v45  ;;  %v435_v43 = vmul.f32 %v2493_v55, %v2493_v55  ;;  %v681_v47 = vmul.f32 %v649_v59, %v570_v40  ;;  %v682_v63 = vmul.f32 %v650_v33, %v570_v40 }
 0x17a   :  { %v574_v3 = vmul.f32 0.5, %v573_v60  ;;  %vm587_vm3 = vweird.f32 %v2486_v57  ;;  %v653_v22 = vsub.f32 %v2213_v25, %v2477_v15  ;;  %v654_v40 = vsub.f32 %v2216_v27, %v2477_v15 }
 0x17b   :  { %v451_v13 = vsub.f32 %v419_v26, %v435_v43  ;;  %v718_v52 = vmul.f32 %v2341_v10, %v681_v47  ;;  %v719_v41 = vmul.f32 %v2347_v28, %v682_v63 }
 0x17c   :  { %v575_v51 = vsub.f32 1.5, %v574_v3 }
 0x17d   :  { %v1792_v8 = vpop.eup %1791  ;;  %v2504_v42 = vadd.f32 1e-05, %v451_v13  ;;  %v755_v58 = vadd.f32 %v2355_v36, %v718_v52  ;;  %v756_v1 = vadd.f32 %v2362_v61, %v719_v41 }
 0x17e   :  { %v576_v56 = vmul.f32 %v1790_v31, %v575_v51  ;;  %v582_v23 = vmul.f32 %v1792_v8, %v2486_v57  ;;  %v304_v46 = vpop.xlane.xlu1 %303  ;;  %vm588_vm2 = vweird.f32 %v1792_v8 }
 0x17f   :  { %1793 = vrsqrt.f32 %v2504_v42  ;;  %v2510_v62 = vmul.f32 0.005, %v304_v46  ;;  %v787_v16 = vmax.f32 %v755_v58, 0.0  ;;  %v788_v12 = vmax.f32 %v756_v1, 0.0  ;;  %vm589_vm4 = vmor %vm587_vm3, %vm588_vm2 }
 0x180   :  { %v583_v5 = vmul.f32 %v1792_v8, %v582_v23  ;;  %v384_v2 = vpop.xlane.xlu0 %383  ;;  %v580_v20 = vsel %vm579_vm1, %v1790_v31, %v576_v56  ;;  %vm597_vm6 = vweird.f32 %v2504_v42 }
 0x181   :  { %v436_v19 = vmul.f32 %v2510_v62, %v2510_v62  ;;  %v420_v48 = vmul.f32 0.005, %v384_v2  ;;  %v809_v39 = vpack.c.bf16 %v787_v16, %v785_v4  ;;  %v810_v0 = vpack.c.bf16 %v788_v12, %v786_v29 }
 0x182   :  { %v584_v24 = vmul.f32 0.5, %v583_v5  ;;  %v683_v33 = vmul.f32 %v651_v7, %v580_v20  ;;  %v684_v60 = vmul.f32 %v652_v18, %v580_v20 }
 0x183   :  { %v452_v21 = vsub.f32 %v420_v48, %v436_v19  ;;  %975 = vmatmul.bf16.gmra.mxu2 %v809_v39  ;;  %1024 = vmatmul.bf16.gmra.mxu3 %v810_v0  ;;  %v655_v19 = vsub.f32 %v2225_v35, %v2493_v55  ;;  %v656_v39 = vsub.f32 %v2228_v38, %v2493_v55 }
 0x184   :  { %v585_v32 = vsub.f32 1.5, %v584_v24  ;;  %v720_v3 = vmul.f32 %v2341_v10, %v683_v33  ;;  %v721_v47 = vmul.f32 %v2347_v28, %v684_v60  ;;  %v657_v38 = vsub.f32 %v2243_v49, %v2510_v62 }
 0x185   :  { %v1794_v53 = vpop.eup %1793  ;;  %v2520_v59 = vadd.f32 1e-05, %v452_v21  ;;  %v658_v55 = vsub.f32 %v2246_v54, %v2510_v62 }
 0x186   :  { %v586_v45 = vmul.f32 %v1792_v8, %v585_v32  ;;  %v592_v31 = vmul.f32 %v1794_v53, %v2504_v42  ;;  %v307_v14 = vpop.xlane.xlu1 %306  ;;  %vm598_vm5 = vweird.f32 %v1794_v53  ;;  %v758_v50 = vadd.f32 %v2362_v61, %v721_v47 }
 0x187   :  { %1795 = vrsqrt.f32 %v2520_v59  ;;  %v2525_v17 = vmul.f32 0.005, %v307_v14  ;;  %vm599_vm7 = vmor %vm597_vm6, %vm598_vm5  ;;  %vm607_vm9 = vweird.f32 %v2520_v59 }
 0x188   :  { %v593_v37 = vmul.f32 %v1794_v53, %v592_v31  ;;  %v387_v26 = vpop.xlane.xlu0 %386  ;;  %v590_v43 = vsel %vm589_vm4, %v1792_v8, %v586_v45  ;;  %v757_v8 = vadd.f32 %v2355_v36, %v720_v3  ;;  %v790_v29 = vmax.f32 %v758_v50, 0.0 }
 0x189   :  { %v437_v57 = vmul.f32 %v2525_v17, %v2525_v17  ;;  %v421_v44 = vmul.f32 0.005, %v387_v26  ;;  %v685_v13 = vmul.f32 %v653_v22, %v590_v43  ;;  %v686_v51 = vmul.f32 %v654_v40, %v590_v43 }
 0x18a   :  { %v594_v63 = vmul.f32 0.5, %v593_v37  ;;  %v789_v42 = vmax.f32 %v757_v8, 0.0 }
 0x18b   :  { %v453_v52 = vsub.f32 %v421_v44, %v437_v57  ;;  %v722_v25 = vmul.f32 %v2341_v10, %v685_v13  ;;  %v723_v27 = vmul.f32 %v2347_v28, %v686_v51 }
 0x18c   :  { %v595_v6 = vsub.f32 1.5, %v594_v63 }
 0x18d   :  { %v1796_v15 = vpop.eup %1795  ;;  %v2537_v41 = vadd.f32 1e-05, %v453_v52  ;;  %v759_v46 = vadd.f32 %v2355_v36, %v722_v25  ;;  %v760_v1 = vadd.f32 %v2362_v61, %v723_v27 }
 0x18e   :  { %v596_v56 = vmul.f32 %v1794_v53, %v595_v6  ;;  %v602_v23 = vmul.f32 %v1796_v15, %v2520_v59  ;;  %v310_v58 = vpop.xlane.xlu2 %309  ;;  %vm608_vm8 = vweird.f32 %v1796_v15 }
 0x18f   :  { %1797 = vrsqrt.f32 %v2537_v41  ;;  %v2546_v2 = vmul.f32 0.005, %v310_v58  ;;  %v791_v4 = vmax.f32 %v759_v46, 0.0  ;;  %v792_v24 = vmax.f32 %v760_v1, 0.0  ;;  %vm609_vm10 = vmor %vm607_vm9, %vm608_vm8 }
 0x190   :  { %v603_v5 = vmul.f32 %v1796_v15, %v602_v23  ;;  %v600_v16 = vsel %vm599_vm7, %v1794_v53, %v596_v56  ;;  %v390_v48 = vpop.xlane.xlu1 %389  ;;  %vm617_vm12 = vweird.f32 %v2537_v41  ;;  %v659_v23 = vsub.f32 %v2267_v9, %v2525_v17 }
 0x191   :  { %v438_v20 = vmul.f32 %v2546_v2, %v2546_v2  ;;  %v422_v7 = vmul.f32 0.005, %v390_v48  ;;  %v811_v18 = vpack.c.bf16 %v791_v4, %v789_v42  ;;  %v812_v21 = vpack.c.bf16 %v792_v24, %v790_v29 }
 0x192   :  { %v604_v12 = vmul.f32 0.5, %v603_v5  ;;  %v687_v32 = vmul.f32 %v655_v19, %v600_v16  ;;  %v688_v53 = vmul.f32 %v656_v39, %v600_v16  ;;  %v660_v46 = vsub.f32 %v2270_v11, %v2525_v17 }
 0x193   :  { %v454_v35 = vsub.f32 %v422_v7, %v438_v20  ;;  %980 = vmatmul.bf16.gmra.mxu2 %v811_v18  ;;  %1029 = vmatmul.bf16.gmra.mxu3 %v812_v21  ;;  %v661_v16 = vsub.f32 %v2291_v30, %v2546_v2  ;;  %v662_v19 = vsub.f32 %v2294_v34, %v2546_v2 }
 0x194   :  { %v605_v0 = vsub.f32 1.5, %v604_v12  ;;  %v724_v14 = vmul.f32 %v2341_v10, %v687_v32  ;;  %v725_v37 = vmul.f32 %v2347_v28, %v688_v53 }
 0x195   :  { %v1798_v33 = vpop.eup %1797  ;;  %v470_v31 = vadd.f32 1e-05, %v454_v35 }
 0x196   :  { %v606_v60 = vmul.f32 %v1796_v15, %v605_v0  ;;  %v612_v45 = vmul.f32 %v1798_v33, %v2537_v41  ;;  %v761_v44 = vadd.f32 %v2355_v36, %v724_v14  ;;  %v762_v54 = vadd.f32 %v2362_v61, %v725_v37 }
 0x197   :  { %1799 = vrsqrt.f32 %v470_v31  ;;  %vm618_vm11 = vweird.f32 %v1798_v33  ;;  %vm627_vm15 = vweird.f32 %v470_v31 }
 0x198   :  { %v613_v22 = vmul.f32 %v1798_v33, %v612_v45  ;;  %v610_v40 = vsel %vm609_vm10, %v1796_v15, %v606_v60  ;;  %v793_v51 = vmax.f32 %v761_v44, 0.0  ;;  %v794_v27 = vmax.f32 %v762_v54, 0.0  ;;  %vm619_vm13 = vmor %vm617_vm12, %vm618_vm11 }
 0x199   :  { %v689_v26 = vmul.f32 %v657_v38, %v610_v40  ;;  %v690_v59 = vmul.f32 %v658_v55, %v610_v40 }
 0x19a   :  { %v614_v43 = vmul.f32 0.5, %v613_v22 }
 0x19b   :  { %v726_v57 = vmul.f32 %v2341_v10, %v689_v26  ;;  %v727_v49 = vmul.f32 %v2347_v28, %v690_v59 }
 0x19c   :  { %v615_v3 = vsub.f32 1.5, %v614_v43 }
 0x19d   :  { %v763_v62 = vadd.f32 %v2355_v36, %v726_v57  ;;  %v764_v47 = vadd.f32 %v2362_v61, %v727_v49  ;;  %v1800_v13 = vpop.eup %1799 }
 0x19e   :  { %v616_v63 = vmul.f32 %v1798_v33, %v615_v3  ;;  %v622_v25 = vmul.f32 %v1800_v13, %v470_v31  ;;  %vm628_vm14 = vweird.f32 %v1800_v13 }
 0x19f   :  { %v795_v52 = vmax.f32 %v763_v62, 0.0  ;;  %v796_v6 = vmax.f32 %v764_v47, 0.0  ;;  %vm629_vm0 = vmor %vm627_vm15, %vm628_vm14 }
 0x1a0   :  { %v623_v8 = vmul.f32 %v1800_v13, %v622_v25  ;;  %v620_v56 = vsel %vm619_vm13, %v1798_v33, %v616_v63 }
 0x1a1   :  { %v813_v15 = vpack.c.bf16 %v795_v52, %v793_v51  ;;  %v814_v50 = vpack.c.bf16 %v796_v6, %v794_v27  ;;  %v691_v1 = vmul.f32 %v659_v23, %v620_v56  ;;  %v692_v5 = vmul.f32 %v660_v46, %v620_v56 }
 0x1a2   :  { %v624_v58 = vmul.f32 0.5, %v623_v8 }
 0x1a3   :  { %985 = vmatmul.bf16.gmra.mxu2 %v813_v15  ;;  %1034 = vmatmul.bf16.gmra.mxu3 %v814_v50  ;;  %v728_v9 = vmul.f32 %v2341_v10, %v691_v1  ;;  %v729_v11 = vmul.f32 %v2347_v28, %v692_v5 }
 0x1a4   :  { %v625_v4 = vsub.f32 1.5, %v624_v58 }
 0x1a5   :  { %v765_v24 = vadd.f32 %v2355_v36, %v728_v9  ;;  %v766_v12 = vadd.f32 %v2362_v61, %v729_v11 }
 0x1a6   :  { %v626_v41 = vmul.f32 %v1800_v13, %v625_v4 }
 0x1a7   :  { %v797_v2 = vmax.f32 %v765_v24, 0.0  ;;  %v798_v7 = vmax.f32 %v766_v12, 0.0 }
 0x1a8   :  { %v630_v17 = vsel %vm629_vm0, %v1800_v13, %v626_v41 }
 0x1a9   :  { %v693_v48 = vmul.f32 %v661_v16, %v630_v17  ;;  %v694_v42 = vmul.f32 %v662_v19, %v630_v17 }
 0x1ab   :  { %v730_v29 = vmul.f32 %v2341_v10, %v693_v48  ;;  %v731_v39 = vmul.f32 %v2347_v28, %v694_v42  ;;  %v2588_v10 = vld [vmem:[%s2878_s4] ss:$0 sm:$0xff] }
 0x1ad   :  { %v767_v30 = vadd.f32 %v2355_v36, %v730_v29  ;;  %v768_v34 = vadd.f32 %v2362_v61, %v731_v39 }
 0x1af   :  { %v799_v20 = vmax.f32 %v767_v30, 0.0  ;;  %v800_v18 = vmax.f32 %v768_v34, 0.0 }
 0x1b1   :  { %v815_v21 = vpack.c.bf16 %v799_v20, %v797_v2  ;;  %v816_v32 = vpack.c.bf16 %v800_v18, %v798_v7 }
 0x1b3   :  { %990 = vmatmul.bf16.gmra.mxu2 %v815_v21  ;;  %1039 = vmatmul.bf16.gmra.mxu3 %v816_v32 }
 0x1c6   :  { %v956_v28 = vpop.f32.mrf.mxu2  ;;  %v1005_v53 = vpop.f32.mrf.mxu3 }
 0x1c7   :  { %v957_v0 = vadd.f32 %v2588_v10, %v956_v28 }
 0x1c9   :  { %v2591_v36 = vadd.f32 %v1005_v53, %v957_v0 }
 0x1cb   :  { %1047 = vadd.xlane.f32.xlu2 %v2591_v36  ;;  %v1079_v61 = vmul.f32 %v2591_v36, %v2591_v36 }
 0x1cd   :  { %1095 = vadd.xlane.f32.xlu1 %v1079_v61 }
 0x1ce   :  { %v958_v33 = vpop.f32.mrf.mxu2  ;;  %v1007_v60 = vpop.f32.mrf.mxu3 }
 0x1cf   :  { %v959_v35 = vadd.f32 %v2588_v10, %v958_v33 }
 0x1d1   :  { %v2597_v45 = vadd.f32 %v1007_v60, %v959_v35 }
 0x1d3   :  { %1049 = vadd.xlane.f32.xlu0 %v2597_v45  ;;  %v1080_v38 = vmul.f32 %v2597_v45, %v2597_v45 }
 0x1d5   :  { %1097 = vadd.xlane.f32.xlu2 %v1080_v38 }
 0x1d6   :  { %v961_v55 = vpop.f32.mrf.mxu2  ;;  %v1010_v14 = vpop.f32.mrf.mxu3 }
 0x1d7   :  { %v962_v31 = vadd.f32 %v2588_v10, %v961_v55 }
 0x1d9   :  { %v2603_v22 = vadd.f32 %v1010_v14, %v962_v31 }
 0x1db   :  { %1051 = vadd.xlane.f32.xlu1 %v2603_v22  ;;  %v1081_v40 = vmul.f32 %v2603_v22, %v2603_v22 }
 0x1dd   :  { %1099 = vadd.xlane.f32.xlu0 %v1081_v40 }
 0x1de   :  { %v963_v37 = vpop.f32.mrf.mxu2  ;;  %v1012_v59 = vpop.f32.mrf.mxu3 }
 0x1df   :  { %v964_v26 = vadd.f32 %v2588_v10, %v963_v37 }
 0x1e1   :  { %v2609_v43 = vadd.f32 %v1012_v59, %v964_v26 }
 0x1e3   :  { %1053 = vadd.xlane.f32.xlu2 %v2609_v43  ;;  %v1082_v57 = vmul.f32 %v2609_v43, %v2609_v43 }
 0x1e5   :  { %1101 = vadd.xlane.f32.xlu1 %v1082_v57 }
 0x1e6   :  { %v966_v44 = vpop.f32.mrf.mxu2  ;;  %v1015_v3 = vpop.f32.mrf.mxu3 }
 0x1e7   :  { %v967_v49 = vadd.f32 %v2588_v10, %v966_v44 }
 0x1e9   :  { %v2615_v54 = vadd.f32 %v1015_v3, %v967_v49 }
 0x1eb   :  { %1055 = vadd.xlane.f32.xlu0 %v2615_v54  ;;  %v1083_v62 = vmul.f32 %v2615_v54, %v2615_v54 }
 0x1ed   :  { %1103 = vadd.xlane.f32.xlu2 %v1083_v62 }
 0x1ee   :  { %v968_v47 = vpop.f32.mrf.mxu2  ;;  %v1017_v13 = vpop.f32.mrf.mxu3 }
 0x1ef   :  { %v969_v63 = vadd.f32 %v2588_v10, %v968_v47 }
 0x1f1   :  { %v2621_v51 = vadd.f32 %v1017_v13, %v969_v63 }
 0x1f3   :  { %1057 = vadd.xlane.f32.xlu1 %v2621_v51  ;;  %v1084_v52 = vmul.f32 %v2621_v51, %v2621_v51 }
 0x1f5   :  { %1105 = vadd.xlane.f32.xlu0 %v1084_v52 }
 0x1f6   :  { %v971_v6 = vpop.f32.mrf.mxu2  ;;  %v1020_v27 = vpop.f32.mrf.mxu3 }
 0x1f7   :  { %v972_v25 = vadd.f32 %v2588_v10, %v971_v6 }
 0x1f9   :  { %v2627_v15 = vadd.f32 %v1020_v27, %v972_v25 }
 0x1fb   :  { %1059 = vadd.xlane.f32.xlu2 %v2627_v15  ;;  %v1085_v46 = vmul.f32 %v2627_v15, %v2627_v15 }
 0x1fe   :  { %v973_v8 = vpop.f32.mrf.mxu2  ;;  %v1022_v56 = vpop.f32.mrf.mxu3 }
 0x1ff   :  { %v974_v50 = vadd.f32 %v2588_v10, %v973_v8 }
 0x201   :  { %v2631_v23 = vadd.f32 %v1022_v56, %v974_v50 }
 0x203   :  { %1061 = vadd.xlane.f32.xlu0 %v2631_v23  ;;  %1107 = vadd.xlane.f32.xlu2 %v1085_v46  ;;  %v1086_v58 = vmul.f32 %v2631_v23, %v2631_v23 }
 0x205   :  { %1109 = vadd.xlane.f32.xlu1 %v1086_v58 }
 0x206   :  { %v976_v1 = vpop.f32.mrf.mxu2  ;;  %v1025_v4 = vpop.f32.mrf.mxu3 }
 0x207   :  { %v977_v5 = vadd.f32 %v2588_v10, %v976_v1 }
 0x209   :  { %v2639_v41 = vadd.f32 %v1025_v4, %v977_v5 }
 0x20b   :  { %v1087_v16 = vmul.f32 %v2639_v41, %v2639_v41 }
 0x20d   :  { %1063 = vadd.xlane.f32.xlu1 %v2639_v41  ;;  %1111 = vadd.xlane.f32.xlu0 %v1087_v16 }
 0x20e   :  { %v978_v19 = vpop.f32.mrf.mxu2  ;;  %v1027_v11 = vpop.f32.mrf.mxu3 }
 0x20f   :  { %v979_v9 = vadd.f32 %v2588_v10, %v978_v19 }
 0x211   :  { %v2645_v17 = vadd.f32 %v1027_v11, %v979_v9 }
 0x213   :  { %v1088_v48 = vmul.f32 %v2645_v17, %v2645_v17 }
 0x215   :  { %1113 = vadd.xlane.f32.xlu2 %v1088_v48  ;;  %1065 = vadd.xlane.f32.xlu0 %v2645_v17 }
 0x216   :  { %v981_v42 = vpop.f32.mrf.mxu2  ;;  %v1030_v24 = vpop.f32.mrf.mxu3 }
 0x217   :  { %v982_v29 = vadd.f32 %v2588_v10, %v981_v42  ;;  %v1913_v42 = vmov 0  }
 0x218   :  { %1763 = vset.pattern.permute.xlu2 %v1913_v42  ;;  %1764 = vset.pattern.permute.xlu0 %v1913_v42 }
 0x219   :  { %v2651_v39 = vadd.f32 %v1030_v24, %v982_v29  ;;  %v1501_v29 = vld [vmem:[#allocation2] sm:$0x1] }
 0x21b   :  { %v1089_v12 = vmul.f32 %v2651_v39, %v2651_v39 }
 0x21d   :  { %1067 = vadd.xlane.f32.xlu2 %v2651_v39  ;;  %1115 = vadd.xlane.f32.xlu1 %v1089_v12 }
 0x21e   :  { %v983_v30 = vpop.f32.mrf.mxu2  ;;  %v1032_v2 = vpop.f32.mrf.mxu3 }
 0x21f   :  { %v984_v34 = vadd.f32 %v2588_v10, %v983_v30 }
 0x221   :  { %v2657_v20 = vadd.f32 %v1032_v2, %v984_v34 }
 0x223   :  { %v1090_v7 = vmul.f32 %v2657_v20, %v2657_v20 }
 0x225   :  { %1117 = vadd.xlane.f32.xlu0 %v1090_v7  ;;  %1069 = vadd.xlane.f32.xlu1 %v2657_v20 }
 0x226   :  { %v986_v18 = vpop.f32.mrf.mxu2  ;;  %v1035_v32 = vpop.f32.mrf.mxu3 }
 0x227   :  { %v987_v21 = vadd.f32 %v2588_v10, %v986_v18 }
 0x229   :  { %v2663_v28 = vadd.f32 %v1035_v32, %v987_v21  ;;  %v2700_v32 = vld [vmem:[%s2878_s4 + $0x1] ss:$0 sm:$0xff] }
 0x22b   :  { %v1091_v0 = vmul.f32 %v2663_v28, %v2663_v28 }
 0x22d   :  { %1071 = vadd.xlane.f32.xlu0 %v2663_v28  ;;  %1119 = vadd.xlane.f32.xlu2 %v1091_v0 }
 0x22e   :  { %v988_v53 = vpop.f32.mrf.mxu2  ;;  %v1037_v33 = vpop.f32.mrf.mxu3 }
 0x22f   :  { %v989_v61 = vadd.f32 %v2588_v10, %v988_v53 }
 0x231   :  { %v2669_v35 = vadd.f32 %v1037_v33, %v989_v61 }
 0x233   :  { %v1092_v47 = vmul.f32 %v2669_v35, %v2669_v35 }
 0x235   :  { %1073 = vadd.xlane.f32.xlu2 %v2669_v35 }
 0x236   :  { %v991_v60 = vpop.f32.mrf.mxu2  ;;  %v1040_v55 = vpop.f32.mrf.mxu3 }
 0x237   :  { %v992_v38 = vadd.f32 %v2588_v10, %v991_v60 }
 0x239   :  { %v2673_v31 = vadd.f32 %v1040_v55, %v992_v38 }
 0x23b   :  { %1075 = vadd.xlane.f32.xlu1 %v2673_v31  ;;  %v1093_v14 = vmul.f32 %v2673_v31, %v2673_v31 }
 0x23d   :  { %1123 = vadd.xlane.f32.xlu2 %v1093_v14 }
 0x23e   :  { %v1048_v40 = vpop.xlane.xlu2 %1047  ;;  %v993_v26 = vpop.f32.mrf.mxu2 }
 0x23f   :  { %v1127_v37 = vmul.f32 0.01, %v1048_v40  ;;  %v994_v59 = vadd.f32 %v2588_v10, %v993_v26  ;;  %v1042_v49 = vpop.f32.mrf.mxu3 }
 0x240   :  { %v1096_v57 = vpop.xlane.xlu1 %1095 }
 0x241   :  { %v1159_v44 = vmul.f32 %v1127_v37, %v1127_v37  ;;  %v1143_v3 = vmul.f32 0.01, %v1096_v57  ;;  %v2679_v62 = vadd.f32 %v1042_v49, %v994_v59  ;;  %v1367_v18 = vsub.f32 %v2591_v36, %v1127_v37  ;;  %v2707_v36 = vld [vmem:[%s2878_s4 + $0x2] ss:$0 sm:$0xff]  ;;  %s1914_s4 = smov [#allocation8]  }
 0x242   :  { %s1610_s28 = sshll.u32 %s1914_s4, 4  ;;  %s1611_s28 = int_to_ptr.vmem [resolvable:$true] %s1610_s28 }
 0x243   :  { %v1175_v63 = vsub.f32 %v1143_v3, %v1159_v44  ;;  %1077 = vadd.xlane.f32.xlu0 %v2679_v62  ;;  %1121 = vadd.xlane.f32.xlu1 %v1092_v47  ;;  %v1094_v8 = vmul.f32 %v2679_v62, %v2679_v62  ;;  %v2711_v44 = vld [vmem:[#allocation6] ss:$0 sm:$0xff] }
 0x245   :  { %v1191_v13 = vadd.f32 1e-05, %v1175_v63 }
 0x246   :  { %v1050_v52 = vpop.xlane.xlu0 %1049 }
 0x247   :  { %1801 = vrsqrt.f32 %v1191_v13  ;;  %v2684_v6 = vmul.f32 0.01, %v1050_v52  ;;  %vm1213_vm2 = vweird.f32 %v1191_v13 }
 0x248   :  { %v1098_v25 = vpop.xlane.xlu2 %1097 }
 0x249   :  { %v1160_v10 = vmul.f32 %v2684_v6, %v2684_v6  ;;  %v1144_v27 = vmul.f32 0.01, %v1098_v25  ;;  %v1368_v52 = vsub.f32 %v2597_v45, %v2684_v6 }
 0x24b   :  { %v1176_v50 = vsub.f32 %v1144_v27, %v1160_v10  ;;  %1125 = vadd.xlane.f32.xlu0 %v1094_v8 }
 0x24d   :  { %v1802_v56 = vpop.eup %1801  ;;  %v1192_v46 = vadd.f32 1e-05, %v1176_v50 }
 0x24e   :  { %v1208_v58 = vmul.f32 %v1802_v56, %v1191_v13  ;;  %v1052_v1 = vpop.xlane.xlu1 %1051  ;;  %vm1214_vm1 = vweird.f32 %v1802_v56 }
 0x24f   :  { %1803 = vrsqrt.f32 %v1192_v46  ;;  %v2690_v5 = vmul.f32 0.01, %v1052_v1  ;;  %vm1215_vm3 = vmor %vm1213_vm2, %vm1214_vm1  ;;  %vm1223_vm5 = vweird.f32 %v1192_v46 }
 0x250   :  { %v1209_v4 = vmul.f32 %v1802_v56, %v1208_v58  ;;  %v1100_v16 = vpop.xlane.xlu0 %1099 }
 0x251   :  { %v1161_v19 = vmul.f32 %v2690_v5, %v2690_v5  ;;  %v1145_v9 = vmul.f32 0.01, %v1100_v16  ;;  %v1369_v42 = vsub.f32 %v2603_v22, %v2690_v5 }
 0x252   :  { %v1210_v11 = vmul.f32 0.5, %v1209_v4 }
 0x253   :  { %v1177_v48 = vsub.f32 %v1145_v9, %v1161_v19 }
 0x254   :  { %v1211_v24 = vsub.f32 1.5, %v1210_v11 }
 0x255   :  { %v1804_v12 = vpop.eup %1803  ;;  %v1193_v30 = vadd.f32 1e-05, %v1177_v48  ;;  %1504 = vperm.xlu2 %1763, %v1501_v29  }
 0x256   :  { %v1212_v34 = vmul.f32 %v1802_v56, %v1211_v24  ;;  %v1218_v2 = vmul.f32 %v1804_v12, %v1192_v46  ;;  %v1054_v7 = vpop.xlane.xlu2 %1053  ;;  %vm1224_vm4 = vweird.f32 %v1804_v12 }
 0x257   :  { %1805 = vrsqrt.f32 %v1193_v30  ;;  %v2695_v21 = vmul.f32 0.01, %v1054_v7  ;;  %vm1225_vm6 = vmor %vm1223_vm5, %vm1224_vm4  ;;  %vm1233_vm8 = vweird.f32 %v1193_v30 }
 0x258   :  { %v1219_v0 = vmul.f32 %v1804_v12, %v1218_v2  ;;  %v1102_v53 = vpop.xlane.xlu1 %1101  ;;  %v1216_v61 = vsel %vm1215_vm3, %v1802_v56, %v1212_v34 }
 0x259   :  { %v1162_v33 = vmul.f32 %v2695_v21, %v2695_v21  ;;  %v1146_v60 = vmul.f32 0.01, %v1102_v53  ;;  %v1383_v38 = vmul.f32 %v1367_v18, %v1216_v61 }
 0x25a   :  { %v1220_v55 = vmul.f32 0.5, %v1219_v0 }
 0x25b   :  { %v1178_v14 = vsub.f32 %v1146_v60, %v1162_v33  ;;  %v1400_v40 = vmul.f32 %v2700_v32, %v1383_v38 }
 0x25c   :  { %v1221_v37 = vsub.f32 1.5, %v1220_v55 }
 0x25d   :  { %v1806_v26 = vpop.eup %1805  ;;  %v1194_v59 = vadd.f32 1e-05, %v1178_v14  ;;  %v1417_v57 = vadd.f32 %v2707_v36, %v1400_v40 }
 0x25e   :  { %v1222_v49 = vmul.f32 %v1804_v12, %v1221_v37  ;;  %v1228_v3 = vmul.f32 %v1806_v26, %v1193_v30  ;;  %v1056_v47 = vpop.xlane.xlu0 %1055  ;;  %vm1234_vm7 = vweird.f32 %v1806_v26  ;;  %v1370_v37 = vsub.f32 %v2609_v43, %v2695_v21 }
 0x25f   :  { %1807 = vrsqrt.f32 %v1194_v59  ;;  %v2713_v63 = vmul.f32 0.01, %v1056_v47  ;;  %v1433_v13 = vmax.f32 %v1417_v57, 0.0  ;;  %vm1235_vm9 = vmor %vm1233_vm8, %vm1234_vm7  ;;  %vm1243_vm11 = vweird.f32 %v1194_v59 }
 0x260   :  { %v1229_v25 = vmul.f32 %v1806_v26, %v1228_v3  ;;  %v1104_v10 = vpop.xlane.xlu2 %1103  ;;  %v1226_v27 = vsel %vm1225_vm6, %v1804_v12, %v1222_v49 }
 0x261   :  { %v1163_v8 = vmul.f32 %v2713_v63, %v2713_v63  ;;  %v1147_v50 = vmul.f32 0.01, %v1104_v10  ;;  %v1453_v56 = vmul.f32 %v2711_v44, %v1433_v13  ;;  %v1384_v58 = vmul.f32 %v1368_v52, %v1226_v27 }
 0x262   :  { %v1230_v46 = vmul.f32 0.5, %v1229_v25 }
 0x263   :  { %v1179_v1 = vsub.f32 %v1147_v50, %v1163_v8  ;;  %1469 = vadd.xlane.f32.xlu1 %v1453_v56  ;;  %v1401_v16 = vmul.f32 %v2700_v32, %v1384_v58 }
 0x264   :  { %v1231_v4 = vsub.f32 1.5, %v1230_v46 }
 0x265   :  { %v1808_v19 = vpop.eup %1807  ;;  %v1195_v9 = vadd.f32 1e-05, %v1179_v1  ;;  %v1418_v48 = vadd.f32 %v2707_v36, %v1401_v16 }
 0x266   :  { %v1232_v45 = vmul.f32 %v1806_v26, %v1231_v4  ;;  %v1238_v6 = vmul.f32 %v1808_v19, %v1194_v59  ;;  %v1058_v11 = vpop.xlane.xlu1 %1057  ;;  %vm1244_vm10 = vweird.f32 %v1808_v19  ;;  %v1371_v4 = vsub.f32 %v2615_v54, %v2713_v63 }
 0x267   :  { %1809 = vrsqrt.f32 %v1195_v9  ;;  %v2724_v29 = vmul.f32 0.01, %v1058_v11  ;;  %v1434_v34 = vmax.f32 %v1418_v48, 0.0  ;;  %vm1245_vm12 = vmor %vm1243_vm11, %vm1244_vm10  ;;  %vm1253_vm14 = vweird.f32 %v1195_v9 }
 0x268   :  { %v1239_v24 = vmul.f32 %v1808_v19, %v1238_v6  ;;  %v1106_v12 = vpop.xlane.xlu0 %1105  ;;  %v1236_v2 = vsel %vm1235_vm9, %v1806_v26, %v1232_v45 }
 0x269   :  { %v1164_v7 = vmul.f32 %v2724_v29, %v2724_v29  ;;  %v1148_v18 = vmul.f32 0.01, %v1106_v12  ;;  %v1385_v30 = vmul.f32 %v1369_v42, %v1236_v2  ;;  %v1454_v53 = vmul.f32 %v2711_v44, %v1434_v34 }
 0x26a   :  { %v1240_v0 = vmul.f32 0.5, %v1239_v24 }
 0x26b   :  { %v1180_v61 = vsub.f32 %v1148_v18, %v1164_v7  ;;  %v1402_v33 = vmul.f32 %v2700_v32, %v1385_v30  ;;  %1471 = vadd.xlane.f32.xlu0 %v1454_v53  ;;  %v1372_v30 = vsub.f32 %v2621_v51, %v2724_v29 }
 0x26c   :  { %v1241_v22 = vsub.f32 1.5, %v1240_v0 }
 0x26d   :  { %v1810_v5 = vpop.eup %1809  ;;  %v1196_v60 = vadd.f32 1e-05, %v1180_v61  ;;  %v1419_v38 = vadd.f32 %v2707_v36, %v1402_v33 }
 0x26e   :  { %v1242_v55 = vmul.f32 %v1808_v19, %v1241_v22  ;;  %v1248_v14 = vmul.f32 %v1810_v5, %v1195_v9  ;;  %v1060_v40 = vpop.xlane.xlu2 %1059  ;;  %vm1254_vm13 = vweird.f32 %v1810_v5 }
 0x26f   :  { %1811 = vrsqrt.f32 %v1196_v60  ;;  %v1435_v26 = vmax.f32 %v1419_v38, 0.0  ;;  %v2734_v52 = vmul.f32 0.01, %v1060_v40  ;;  %vm1255_vm15 = vmor %vm1253_vm14, %vm1254_vm13  ;;  %vm1263_vm1 = vweird.f32 %v1196_v60 }
 0x270   :  { %v1249_v57 = vmul.f32 %v1810_v5, %v1248_v14  ;;  %v1246_v49 = vsel %vm1245_vm12, %v1808_v19, %v1242_v55 }
 0x271   :  { %v1455_v3 = vmul.f32 %v2711_v44, %v1435_v26  ;;  %v1386_v47 = vmul.f32 %v1370_v37, %v1246_v49  ;;  %v1165_v56 = vmul.f32 %v2734_v52, %v2734_v52 }
 0x272   :  { %v1250_v13 = vmul.f32 0.5, %v1249_v57 }
 0x273   :  { %1473 = vadd.xlane.f32.xlu1 %v1455_v3  ;;  %v1403_v25 = vmul.f32 %v2700_v32, %v1386_v47 }
 0x274   :  { %v1251_v59 = vsub.f32 1.5, %v1250_v13 }
 0x275   :  { %v1812_v10 = vpop.eup %1811  ;;  %v1420_v27 = vadd.f32 %v2707_v36, %v1403_v25 }
 0x276   :  { %v1252_v43 = vmul.f32 %v1810_v5, %v1251_v59  ;;  %v1258_v21 = vmul.f32 %v1812_v10, %v1196_v60  ;;  %v1108_v8 = vpop.xlane.xlu2 %1107  ;;  %v1062_v50 = vpop.xlane.xlu0 %1061  ;;  %vm1264_vm0 = vweird.f32 %v1812_v10 }
 0x277   :  { %v1149_v46 = vmul.f32 0.01, %v1108_v8  ;;  %v2740_v58 = vmul.f32 0.01, %v1062_v50  ;;  %v1436_v1 = vmax.f32 %v1420_v27, 0.0  ;;  %vm1265_vm2 = vmor %vm1263_vm1, %vm1264_vm0 }
 0x278   :  { %v1259_v16 = vmul.f32 %v1812_v10, %v1258_v21  ;;  %v1110_v19 = vpop.xlane.xlu1 %1109  ;;  %v1256_v45 = vsel %vm1255_vm15, %v1810_v5, %v1252_v43 }
 0x279   :  { %v1181_v6 = vsub.f32 %v1149_v46, %v1165_v56  ;;  %v1166_v9 = vmul.f32 %v2740_v58, %v2740_v58  ;;  %v1150_v11 = vmul.f32 0.01, %v1110_v19  ;;  %v1456_v42 = vmul.f32 %v2711_v44, %v1436_v1 }
 0x27a   :  { %v1260_v48 = vmul.f32 0.5, %v1259_v16  ;;  %v1387_v24 = vmul.f32 %v1371_v4, %v1256_v45  ;;  %v1373_v4 = vsub.f32 %v2627_v15, %v2734_v52 }
 0x27b   :  { %v1197_v12 = vadd.f32 1e-05, %v1181_v6  ;;  %v1182_v34 = vsub.f32 %v1150_v11, %v1166_v9  ;;  %1475 = vadd.xlane.f32.xlu0 %v1456_v42 }
 0x27c   :  { %v1261_v2 = vsub.f32 1.5, %v1260_v48  ;;  %v1404_v7 = vmul.f32 %v2700_v32, %v1387_v24  ;;  %v1374_v48 = vsub.f32 %v2631_v23, %v2740_v58 }
 0x27d   :  { %1813 = vrsqrt.f32 %v1197_v12  ;;  %v1198_v54 = vadd.f32 1e-05, %v1182_v34  ;;  %vm1273_vm4 = vweird.f32 %v1197_v12 }
 0x27e   :  { %v1262_v63 = vmul.f32 %v1812_v10, %v1261_v2  ;;  %v1421_v18 = vadd.f32 %v2707_v36, %v1404_v7 }
 0x27f   :  { %1815 = vrsqrt.f32 %v1198_v54  ;;  %vm1283_vm7 = vweird.f32 %v1198_v54 }
 0x280   :  { %v1064_v0 = vpop.xlane.xlu1 %1063  ;;  %v1112_v53 = vpop.xlane.xlu0 %1111  ;;  %v1437_v61 = vmax.f32 %v1421_v18, 0.0  ;;  %v1266_v33 = vsel %vm1265_vm2, %v1812_v10, %v1262_v63 }
 0x281   :  { %v2751_v22 = vmul.f32 0.01, %v1064_v0  ;;  %v1388_v5 = vmul.f32 %v1372_v30, %v1266_v33  ;;  %v1151_v14 = vmul.f32 0.01, %v1112_v53 }
 0x282   :  { %v1457_v38 = vmul.f32 %v2711_v44, %v1437_v61 }
 0x283   :  { %v1814_v55 = vpop.eup %1813  ;;  %v1167_v60 = vmul.f32 %v2751_v22, %v2751_v22  ;;  %v1405_v40 = vmul.f32 %v2700_v32, %v1388_v5 }
 0x284   :  { %v1268_v37 = vmul.f32 %v1814_v55, %v1197_v12  ;;  %1477 = vadd.xlane.f32.xlu1 %v1457_v38  ;;  %vm1274_vm3 = vweird.f32 %v1814_v55 }
 0x285   :  { %v1816_v51 = vpop.eup %1815  ;;  %v1183_v29 = vsub.f32 %v1151_v14, %v1167_v60  ;;  %v1422_v26 = vadd.f32 %v2707_v36, %v1405_v40  ;;  %vm1275_vm6 = vmor %vm1273_vm4, %vm1274_vm3 }
 0x286   :  { %v1269_v57 = vmul.f32 %v1814_v55, %v1268_v37  ;;  %v1278_v49 = vmul.f32 %v1816_v51, %v1198_v54  ;;  %vm1284_vm5 = vweird.f32 %v1816_v51 }
 0x287   :  { %v1199_v3 = vadd.f32 1e-05, %v1183_v29  ;;  %v1438_v47 = vmax.f32 %v1422_v26, 0.0  ;;  %vm1285_vm8 = vmor %vm1283_vm7, %vm1284_vm5 }
 0x288   :  { %v1270_v13 = vmul.f32 0.5, %v1269_v57  ;;  %v1279_v25 = vmul.f32 %v1816_v51, %v1278_v49  ;;  %v1114_v59 = vpop.xlane.xlu2 %1113  ;;  %v1066_v10 = vpop.xlane.xlu0 %1065 }
 0x289   :  { %1817 = vrsqrt.f32 %v1199_v3  ;;  %v2758_v27 = vmul.f32 0.01, %v1066_v10  ;;  %v1458_v8 = vmul.f32 %v2711_v44, %v1438_v47  ;;  %v1152_v50 = vmul.f32 0.01, %v1114_v59 }
 0x28a   :  { %v1271_v43 = vsub.f32 1.5, %v1270_v13  ;;  %v1280_v21 = vmul.f32 0.5, %v1279_v25  ;;  %vm1293_vm10 = vweird.f32 %v1199_v3 }
 0x28b   :  { %v1168_v56 = vmul.f32 %v2758_v27, %v2758_v27  ;;  %1479 = vadd.xlane.f32.xlu0 %v1458_v8 }
 0x28c   :  { %v1272_v46 = vmul.f32 %v1814_v55, %v1271_v43  ;;  %v1281_v1 = vsub.f32 1.5, %v1280_v21 }
 0x28d   :  { %v1184_v16 = vsub.f32 %v1152_v50, %v1168_v56  ;;  %v1376_v50 = vsub.f32 %v2645_v17, %v2758_v27 }
 0x28e   :  { %v1282_v19 = vmul.f32 %v1816_v51, %v1281_v1  ;;  %v1276_v45 = vsel %vm1275_vm6, %v1814_v55, %v1272_v46 }
 0x28f   :  { %v1818_v6 = vpop.eup %1817  ;;  %v1200_v9 = vadd.f32 1e-05, %v1184_v16  ;;  %v1389_v11 = vmul.f32 %v1373_v4, %v1276_v45 }
 0x290   :  { %v1288_v42 = vmul.f32 %v1818_v6, %v1199_v3  ;;  %v1068_v24 = vpop.xlane.xlu2 %1067  ;;  %v1286_v12 = vsel %vm1285_vm8, %v1816_v51, %v1282_v19  ;;  %v1116_v2 = vpop.xlane.xlu1 %1115  ;;  %vm1294_vm9 = vweird.f32 %v1818_v6  ;;  %v1375_v51 = vsub.f32 %v2639_v41, %v2751_v22 }
 0x291   :  { %1819 = vrsqrt.f32 %v1200_v9  ;;  %v2767_v34 = vmul.f32 0.01, %v1068_v24  ;;  %v1406_v15 = vmul.f32 %v2700_v32, %v1389_v11  ;;  %v1390_v7 = vmul.f32 %v1374_v48, %v1286_v12  ;;  %vm1295_vm11 = vmor %vm1293_vm10, %vm1294_vm9 }
 0x292   :  { %v1289_v52 = vmul.f32 %v1818_v6, %v1288_v42  ;;  %v1153_v63 = vmul.f32 0.01, %v1116_v2  ;;  %vm1303_vm13 = vweird.f32 %v1200_v9 }
 0x293   :  { %v1169_v54 = vmul.f32 %v2767_v34, %v2767_v34  ;;  %v1423_v18 = vadd.f32 %v2707_v36, %v1406_v15  ;;  %v1407_v23 = vmul.f32 %v2700_v32, %v1390_v7 }
 0x294   :  { %v1290_v30 = vmul.f32 0.5, %v1289_v52 }
 0x295   :  { %v1185_v58 = vsub.f32 %v1153_v63, %v1169_v54  ;;  %v1439_v0 = vmax.f32 %v1423_v18, 0.0  ;;  %v1424_v61 = vadd.f32 %v2707_v36, %v1407_v23  ;;  %v1377_v18 = vsub.f32 %v2651_v39, %v2767_v34 }
 0x296   :  { %v1291_v53 = vsub.f32 1.5, %v1290_v30 }
 0x297   :  { %v1820_v33 = vpop.eup %1819  ;;  %v1201_v5 = vadd.f32 1e-05, %v1185_v58  ;;  %v1459_v38 = vmul.f32 %v2711_v44, %v1439_v0  ;;  %v1440_v14 = vmax.f32 %v1424_v61, 0.0 }
 0x298   :  { %v1292_v55 = vmul.f32 %v1818_v6, %v1291_v53  ;;  %v1298_v60 = vmul.f32 %v1820_v33, %v1200_v9  ;;  %v1070_v40 = vpop.xlane.xlu1 %1069  ;;  %v1118_v37 = vpop.xlane.xlu0 %1117  ;;  %vm1304_vm12 = vweird.f32 %v1820_v33 }
 0x299   :  { %1821 = vrsqrt.f32 %v1201_v5  ;;  %1481 = vadd.xlane.f32.xlu1 %v1459_v38  ;;  %v2778_v26 = vmul.f32 0.01, %v1070_v40  ;;  %v1460_v57 = vmul.f32 %v2711_v44, %v1440_v14  ;;  %v1154_v25 = vmul.f32 0.01, %v1118_v37  ;;  %vm1305_vm14 = vmor %vm1303_vm13, %vm1304_vm12 }
 0x29a   :  { %v1299_v29 = vmul.f32 %v1820_v33, %v1298_v60  ;;  %v1296_v49 = vsel %vm1295_vm11, %v1818_v6, %v1292_v55  ;;  %vm1313_vm0 = vweird.f32 %v1201_v5 }
 0x29b   :  { %v1170_v13 = vmul.f32 %v2778_v26, %v2778_v26  ;;  %1483 = vadd.xlane.f32.xlu2 %v1460_v57  ;;  %v1391_v3 = vmul.f32 %v1375_v51, %v1296_v49  ;;  %v1378_v34 = vsub.f32 %v2657_v20, %v2778_v26 }
 0x29c   :  { %v1300_v47 = vmul.f32 0.5, %v1299_v29 }
 0x29d   :  { %v1186_v10 = vsub.f32 %v1154_v25, %v1170_v13  ;;  %v1408_v43 = vmul.f32 %v2700_v32, %v1391_v3 }
 0x29e   :  { %v1301_v59 = vsub.f32 1.5, %v1300_v47 }
 0x29f   :  { %v1822_v41 = vpop.eup %1821  ;;  %v1202_v8 = vadd.f32 1e-05, %v1186_v10  ;;  %v1425_v1 = vadd.f32 %v2707_v36, %v1408_v43 }
 0x2a0   :  { %v1302_v22 = vmul.f32 %v1820_v33, %v1301_v59  ;;  %v1308_v21 = vmul.f32 %v1822_v41, %v1201_v5  ;;  %v1120_v56 = vpop.xlane.xlu2 %1119  ;;  %v1072_v46 = vpop.xlane.xlu0 %1071  ;;  %vm1314_vm15 = vweird.f32 %v1822_v41 }
 0x2a1   :  { %1823 = vrsqrt.f32 %v1202_v8  ;;  %v2787_v45 = vmul.f32 0.01, %v1072_v46  ;;  %v1441_v6 = vmax.f32 %v1425_v1, 0.0  ;;  %v1155_v48 = vmul.f32 0.01, %v1120_v56  ;;  %vm1315_vm1 = vmor %vm1313_vm0, %vm1314_vm15 }
 0x2a2   :  { %v1306_v4 = vsel %vm1305_vm14, %v1820_v33, %v1302_v22  ;;  %v1309_v16 = vmul.f32 %v1822_v41, %v1308_v21  ;;  %vm1323_vm3 = vweird.f32 %v1202_v8 }
 0x2a3   :  { %v1392_v19 = vmul.f32 %v1376_v50, %v1306_v4  ;;  %v1171_v9 = vmul.f32 %v2787_v45, %v2787_v45  ;;  %v1461_v42 = vmul.f32 %v2711_v44, %v1441_v6  ;;  %v1379_v46 = vsub.f32 %v2663_v28, %v2787_v45 }
 0x2a4   :  { %v1310_v11 = vmul.f32 0.5, %v1309_v16 }
 0x2a5   :  { %v1409_v17 = vmul.f32 %v2700_v32, %v1392_v19  ;;  %v1187_v24 = vsub.f32 %v1155_v48, %v1171_v9  ;;  %1485 = vadd.xlane.f32.xlu0 %v1461_v42 }
 0x2a6   :  { %v1311_v27 = vsub.f32 1.5, %v1310_v11 }
 0x2a7   :  { %v1426_v12 = vadd.f32 %v2707_v36, %v1409_v17  ;;  %v1824_v2 = vpop.eup %1823  ;;  %v1203_v7 = vadd.f32 1e-05, %v1187_v24 }
 0x2a8   :  { %v1312_v15 = vmul.f32 %v1822_v41, %v1311_v27  ;;  %v1318_v52 = vmul.f32 %v1824_v2, %v1202_v8  ;;  %v1074_v54 = vpop.xlane.xlu2 %1073  ;;  %vm1324_vm2 = vweird.f32 %v1824_v2 }
 0x2a9   :  { %v1442_v63 = vmax.f32 %v1426_v12, 0.0  ;;  %1825 = vrsqrt.f32 %v1203_v7  ;;  %vm1325_vm4 = vmor %vm1323_vm3, %vm1324_vm2  ;;  %v2805_v51 = vmul.f32 0.01, %v1074_v54  ;;  %vm1333_vm6 = vweird.f32 %v1203_v7 }
 0x2aa   :  { %v1316_v30 = vsel %vm1315_vm1, %v1822_v41, %v1312_v15  ;;  %v1319_v23 = vmul.f32 %v1824_v2, %v1318_v52  ;;  %vm1545_vm1 = vcmask 130112   ;;  %vm1549_vm2 = vcmask 195712  }
 0x2ab   :  { %v1462_v58 = vmul.f32 %v2711_v44, %v1442_v63  ;;  %v1393_v0 = vmul.f32 %v1377_v18, %v1316_v30  ;;  %v1172_v20 = vmul.f32 %v2805_v51, %v2805_v51  ;;  %vm1553_vm3 = vcmask 261312  }
 0x2ac   :  { %v1320_v53 = vmul.f32 0.5, %v1319_v23 }
 0x2ad   :  { %1487 = vadd.xlane.f32.xlu1 %v1462_v58  ;;  %v1410_v61 = vmul.f32 %v2700_v32, %v1393_v0 }
 0x2ae   :  { %v1321_v33 = vsub.f32 1.5, %v1320_v53  ;;  %v1076_v5 = vpop.xlane.xlu1 %1075 }
 0x2af   :  { %v2798_v38 = vmul.f32 0.01, %v1076_v5  ;;  %v1427_v55 = vadd.f32 %v2707_v36, %v1410_v61  ;;  %v1826_v60 = vpop.eup %1825 }
 0x2b0   :  { %v1322_v14 = vmul.f32 %v1824_v2, %v1321_v33  ;;  %v1124_v39 = vpop.xlane.xlu2 %1123  ;;  %v1328_v40 = vmul.f32 %v1826_v60, %v1203_v7  ;;  %vm1334_vm5 = vweird.f32 %v1826_v60 }
 0x2b1   :  { %v1173_v37 = vmul.f32 %v2798_v38, %v2798_v38  ;;  %v1157_v29 = vmul.f32 0.01, %v1124_v39  ;;  %v1443_v57 = vmax.f32 %v1427_v55, 0.0  ;;  %vm1335_vm7 = vmor %vm1333_vm6, %vm1334_vm5  ;;  %v1381_v58 = vsub.f32 %v2673_v31, %v2798_v38 }
 0x2b2   :  { %v1326_v49 = vsel %vm1325_vm4, %v1824_v2, %v1322_v14  ;;  %v1329_v47 = vmul.f32 %v1826_v60, %v1328_v40  ;;  %v1380_v39 = vsub.f32 %v2669_v35, %v2805_v51  ;;  %vm1557_vm4 = vcmask 326912  }
 0x2b3   :  { %v1394_v13 = vmul.f32 %v1378_v34, %v1326_v49  ;;  %v1189_v25 = vsub.f32 %v1157_v29, %v1173_v37  ;;  %v1463_v3 = vmul.f32 %v2711_v44, %v1443_v57  ;;  %vm1561_vm5 = vcmask 392512  }
 0x2b4   :  { %v1330_v59 = vmul.f32 0.5, %v1329_v47  ;;  %vm1565_vm6 = vcmask 458112  }
 0x2b5   :  { %v1411_v10 = vmul.f32 %v2700_v32, %v1394_v13  ;;  %v1205_v26 = vadd.f32 1e-05, %v1189_v25  ;;  %1489 = vadd.xlane.f32.xlu0 %v1463_v3 }
 0x2b6   :  { %v1122_v43 = vpop.xlane.xlu1 %1121  ;;  %v1078_v41 = vpop.xlane.xlu0 %1077  ;;  %v1331_v22 = vsub.f32 1.5, %v1330_v59 }
 0x2b7   :  { %v1156_v21 = vmul.f32 0.01, %v1122_v43  ;;  %v1428_v8 = vadd.f32 %v2707_v36, %v1411_v10  ;;  %1827 = vrsqrt.f32 %v1205_v26  ;;  %v1142_v19 = vmul.f32 0.01, %v1078_v41 }
 0x2b8   :  { %v1332_v50 = vmul.f32 %v1826_v60, %v1331_v22  ;;  %vm1353_vm9 = vweird.f32 %v1205_v26 }
 0x2b9   :  { %v1188_v56 = vsub.f32 %v1156_v21, %v1172_v20  ;;  %v1444_v1 = vmax.f32 %v1428_v8, 0.0  ;;  %v1174_v27 = vmul.f32 %v1142_v19, %v1142_v19  ;;  %v1382_v35 = vsub.f32 %v2679_v62, %v1142_v19 }
 0x2ba   :  { %v1336_v4 = vsel %vm1335_vm7, %v1826_v60, %v1332_v50  ;;  %vm1569_vm7 = vcmask 523712  }
 0x2bb   :  { %v1204_v16 = vadd.f32 1e-05, %v1188_v56  ;;  %v1395_v6 = vmul.f32 %v1379_v46, %v1336_v4  ;;  %v1464_v11 = vmul.f32 %v2711_v44, %v1444_v1  ;;  %v1540_v4 = vlaneseq }
 0x2bd   :  { %1829 = vrsqrt.f32 %v1204_v16  ;;  %v1828_v48 = vpop.eup %1827  ;;  %1491 = vadd.xlane.f32.xlu1 %v1464_v11  ;;  %v1412_v42 = vmul.f32 %v2700_v32, %v1395_v6  ;;  %vm1343_vm12 = vweird.f32 %v1204_v16 }
 0x2be   :  { %v1126_v9 = vpop.xlane.xlu0 %1125  ;;  %v1348_v17 = vmul.f32 %v1828_v48, %v1205_v26  ;;  %vm1354_vm8 = vweird.f32 %v1828_v48 }
 0x2bf   :  { %v1158_v24 = vmul.f32 0.01, %v1126_v9  ;;  %v1429_v12 = vadd.f32 %v2707_v36, %v1412_v42  ;;  %vm1355_vm10 = vmor %vm1353_vm9, %vm1354_vm8  ;;  %vm1573_vm8 = vcmask 589312   ;;  %vm1577_vm9 = vcmask 654912  }
 0x2c0   :  { %v1349_v2 = vmul.f32 %v1828_v48, %v1348_v17 }
 0x2c1   :  { %v1190_v28 = vsub.f32 %v1158_v24, %v1174_v27  ;;  %v1445_v45 = vmax.f32 %v1429_v12, 0.0 }
 0x2c2   :  { %v1350_v52 = vmul.f32 0.5, %v1349_v2 }
 0x2c3   :  { %v1830_v15 = vpop.eup %1829  ;;  %v1206_v7 = vadd.f32 1e-05, %v1190_v28  ;;  %v1465_v63 = vmul.f32 %v2711_v44, %v1445_v45 }
 0x2c4   :  { %v1338_v54 = vmul.f32 %v1830_v15, %v1204_v16  ;;  %v1351_v18 = vsub.f32 1.5, %v1350_v52  ;;  %vm1344_vm11 = vweird.f32 %v1830_v15  ;;  %v1505_v16 = vpop.permute.xlu2 %1504 }
 0x2c5   :  { %1831 = vrsqrt.f32 %v1206_v7  ;;  %1493 = vadd.xlane.f32.xlu0 %v1465_v63  ;;  %vm1345_vm13 = vmor %vm1343_vm12, %vm1344_vm11  ;;  %vm1363_vm15 = vweird.f32 %v1206_v7  ;;  %v2832_v6 = vperm.slane %v1505_v16, 0  ;;  %vm1585_vm11 = vcmask 786112  }
 0x2c6   :  { %v1339_v30 = vmul.f32 %v1830_v15, %v1338_v54  ;;  %v1352_v23 = vmul.f32 %v1828_v48, %v1351_v18  ;;  %vm1589_vm12 = vcmask 851712  }
 0x2c8   :  { %v1340_v0 = vmul.f32 0.5, %v1339_v30  ;;  %v1356_v53 = vsel %vm1355_vm10, %v1828_v48, %v1352_v23  ;;  %vm1581_vm10 = vcmask 720512  }
 0x2c9   :  { %v1397_v33 = vmul.f32 %v1381_v58, %v1356_v53 }
 0x2ca   :  { %v1341_v61 = vsub.f32 1.5, %v1340_v0 }
 0x2cb   :  { %v1832_v5 = vpop.eup %1831  ;;  %v1414_v14 = vmul.f32 %v2700_v32, %v1397_v33 }
 0x2cc   :  { %v1342_v55 = vmul.f32 %v1830_v15, %v1341_v61  ;;  %v1358_v60 = vmul.f32 %v1832_v5, %v1206_v7  ;;  %vm1364_vm14 = vweird.f32 %v1832_v5 }
 0x2cd   :  { %v1431_v40 = vadd.f32 %v2707_v36, %v1414_v14  ;;  %vm1365_vm0 = vmor %vm1363_vm15, %vm1364_vm14  ;;  %vm1597_vm14 = vcmask 982912   ;;  %vm1601_vm15 = vcmask 1048512  }
 0x2ce   :  { %v1359_v34 = vmul.f32 %v1832_v5, %v1358_v60  ;;  %v1346_v31 = vsel %vm1345_vm13, %v1830_v15, %v1342_v55  ;;  %vm1593_vm13 = vcmask 917312  }
 0x2cf   :  { %v1396_v38 = vmul.f32 %v1380_v39, %v1346_v31  ;;  %v1447_v29 = vmax.f32 %v1431_v40, 0.0 }
 0x2d0   :  { %v1360_v37 = vmul.f32 0.5, %v1359_v34 }
 0x2d1   :  { %v1413_v57 = vmul.f32 %v2700_v32, %v1396_v38  ;;  %v1467_v47 = vmul.f32 %v2711_v44, %v1447_v29 }
 0x2d2   :  { %v1361_v49 = vsub.f32 1.5, %v1360_v37 }
 0x2d3   :  { %v1430_v13 = vadd.f32 %v2707_v36, %v1413_v57  ;;  %1497 = vadd.xlane.f32.xlu0 %v1467_v47 }
 0x2d4   :  { %v1362_v25 = vmul.f32 %v1832_v5, %v1361_v49 }
 0x2d5   :  { %v1446_v51 = vmax.f32 %v1430_v13, 0.0 }
 0x2d6   :  { %v1366_v3 = vsel %vm1365_vm0, %v1832_v5, %v1362_v25  ;;  %v1470_v22 = vpop.xlane.xlu1 %1469 }
 0x2d7   :  { %v1466_v59 = vmul.f32 %v2711_v44, %v1446_v51  ;;  %v1398_v10 = vmul.f32 %v1382_v35, %v1366_v3  ;;  %v1508_v42 = vadd.f32 %v2832_v6, %v1470_v22 }
 0x2d9   :  { %1495 = vadd.xlane.f32.xlu1 %v1466_v59  ;;  %v1415_v20 = vmul.f32 %v2700_v32, %v1398_v10  ;;  %v2834_v32 = vand.u32 127, %v1540_v4 }
 0x2db   :  { %v1432_v26 = vadd.f32 %v2707_v36, %v1415_v20  ;;  %v1543_v36 = vadd.s32 4294967288, %v2834_v32  ;;  %v1547_v48 = vadd.s32 4294967280, %v2834_v32  ;;  %v1551_v17 = vadd.s32 4294967272, %v2834_v32 }
 0x2dc   :  { %v1555_v24 = vadd.s32 4294967264, %v2834_v32  ;;  %v1559_v28 = vadd.s32 4294967256, %v2834_v32  ;;  %v1563_v52 = vadd.s32 4294967248, %v2834_v32  ;;  %v1542_v18 = vperm.slane %v1508_v42, %v2834_v32 }
 0x2dd   :  { %v1448_v43 = vmax.f32 %v1432_v26, 0.0  ;;  %v1567_v53 = vadd.s32 4294967240, %v2834_v32  ;;  %v1571_v60 = vadd.s32 4294967232, %v2834_v32  ;;  %v1575_v34 = vadd.s32 4294967224, %v2834_v32 }
 0x2de   :  { %v1472_v21 = vpop.xlane.xlu0 %1471  ;;  %v1579_v38 = vadd.s32 4294967216, %v2834_v32  ;;  %v1583_v49 = vadd.s32 4294967208, %v2834_v32  ;;  %v1587_v35 = vadd.s32 4294967200, %v2834_v32  ;;  %v1591_v10 = vadd.s32 4294967192, %v2834_v32 }
 0x2df   :  { %v1468_v41 = vmul.f32 %v2711_v44, %v1448_v43  ;;  %v1509_v44 = vadd.f32 %v2832_v6, %v1472_v21  ;;  %v1599_v16 = vadd.s32 4294967176, %v2834_v32 }
 0x2e1   :  { %1499 = vadd.xlane.f32.xlu1 %v1468_v41  ;;  %v1544_v2 = vperm.slane %v1509_v44, %v1543_v36 }
 0x2e3   :  { %v1546_v58 = vsel %vm1545_vm1, %v1544_v2, %v1542_v18 }
 0x2e6   :  { %v1474_v8 = vpop.xlane.xlu1 %1473 }
 0x2e7   :  { %v1510_v9 = vadd.f32 %v2832_v6, %v1474_v8 }
 0x2e9   :  { %v1548_v15 = vperm.slane %v1510_v9, %v1547_v48 }
 0x2eb   :  { %v1550_v5 = vsel %vm1549_vm2, %v1548_v15, %v1546_v58 }
 0x2ee   :  { %v1476_v50 = vpop.xlane.xlu0 %1475 }
 0x2ef   :  { %v1511_v27 = vadd.f32 %v2832_v6, %v1476_v50 }
 0x2f1   :  { %v1552_v30 = vperm.slane %v1511_v27, %v1551_v17 }
 0x2f3   :  { %v1554_v39 = vsel %vm1553_vm3, %v1552_v30, %v1550_v5 }
 0x2f7   :  { %v1478_v62 = vpop.xlane.xlu1 %1477 }
 0x2f8   :  { %v1512_v12 = vadd.f32 %v2832_v6, %v1478_v62 }
 0x2fa   :  { %v1556_v23 = vperm.slane %v1512_v12, %v1555_v24 }
 0x2fc   :  { %v1558_v31 = vsel %vm1557_vm4, %v1556_v23, %v1554_v39 }
 0x2fe   :  { %v1480_v56 = vpop.xlane.xlu0 %1479 }
 0x2ff   :  { %v1513_v45 = vadd.f32 %v2832_v6, %v1480_v56 }
 0x301   :  { %v1560_v0 = vperm.slane %v1513_v45, %v1559_v28 }
 0x303   :  { %v1562_v29 = vsel %vm1561_vm5, %v1560_v0, %v1558_v31 }
 0x30c   :  { %v1482_v46 = vpop.xlane.xlu1 %1481 }
 0x30d   :  { %v1514_v7 = vadd.f32 %v2832_v6, %v1482_v46  ;;  %v1595_v46 = vadd.s32 4294967184, %v2834_v32 }
 0x30e   :  { %v1484_v54 = vpop.xlane.xlu2 %1483 }
 0x30f   :  { %v1515_v61 = vadd.f32 %v2832_v6, %v1484_v54  ;;  %v1564_v55 = vperm.slane %v1514_v7, %v1563_v52 }
 0x311   :  { %v1568_v57 = vperm.slane %v1515_v61, %v1567_v53  ;;  %v1566_v13 = vsel %vm1565_vm6, %v1564_v55, %v1562_v29 }
 0x313   :  { %v1570_v43 = vsel %vm1569_vm7, %v1568_v57, %v1566_v13 }
 0x318   :  { %v1486_v1 = vpop.xlane.xlu0 %1485 }
 0x319   :  { %v1516_v14 = vadd.f32 %v2832_v6, %v1486_v1 }
 0x31b   :  { %v1572_v25 = vperm.slane %v1516_v14, %v1571_v60 }
 0x31d   :  { %v1574_v21 = vsel %vm1573_vm8, %v1572_v25, %v1570_v43 }
 0x320   :  { %v1488_v19 = vpop.xlane.xlu1 %1487 }
 0x321   :  { %v1517_v40 = vadd.f32 %v2832_v6, %v1488_v19 }
 0x323   :  { %v1576_v59 = vperm.slane %v1517_v40, %v1575_v34 }
 0x325   :  { %v1578_v50 = vsel %vm1577_vm9, %v1576_v59, %v1574_v21 }
 0x328   :  { %v1490_v11 = vpop.xlane.xlu0 %1489 }
 0x329   :  { %v1518_v37 = vadd.f32 %v2832_v6, %v1490_v11 }
 0x32b   :  { %v1580_v26 = vperm.slane %v1518_v37, %v1579_v38 }
 0x32d   :  { %v1582_v56 = vsel %vm1581_vm10, %v1580_v26, %v1578_v50 }
 0x330   :  { %v1492_v63 = vpop.xlane.xlu1 %1491 }
 0x331   :  { %v1519_v47 = vadd.f32 %v2832_v6, %v1492_v63 }
 0x333   :  { %v1584_v41 = vperm.slane %v1519_v47, %v1583_v49 }
 0x335   :  { %v1586_v4 = vsel %vm1585_vm11, %v1584_v41, %v1582_v56 }
 0x338   :  { %v1494_v33 = vpop.xlane.xlu0 %1493 }
 0x339   :  { %v1520_v51 = vadd.f32 %v2832_v6, %v1494_v33 }
 0x33b   :  { %v1588_v8 = vperm.slane %v1520_v51, %v1587_v35 }
 0x33d   :  { %v1590_v19 = vsel %vm1589_vm12, %v1588_v8, %v1586_v4 }
 0x346   :  { %v1498_v22 = vpop.xlane.xlu0 %1497 }
 0x347   :  { %v1522_v1 = vadd.f32 %v2832_v6, %v1498_v22 }
 0x349   :  { %v1596_v48 = vperm.slane %v1522_v1, %v1595_v46 }
 0x34c   :  { %v1496_v3 = vpop.xlane.xlu1 %1495 }
 0x34d   :  { %v1521_v20 = vadd.f32 %v2832_v6, %v1496_v3 }
 0x34f   :  { %v1592_v62 = vperm.slane %v1521_v20, %v1591_v10 }
 0x351   :  { %v1594_v44 = vsel %vm1593_vm13, %v1592_v62, %v1590_v19 }
 0x352   :  { %v1598_v42 = vsel %vm1597_vm14, %v1596_v48, %v1594_v44 }
 0x354   :  { %v1500_v36 = vpop.xlane.xlu1 %1499 }
 0x355   :  { %v1523_v11 = vadd.f32 %v2832_v6, %v1500_v36 }
 0x357   :  { %v1600_v9 = vperm.slane %v1523_v11, %v1599_v16 }
 0x359   :  { %v1602_v17 = vsel %vm1601_vm15, %v1600_v9, %v1598_v42 }
 0x35a   :  { %1604 = vst [vmem:[#allocation8] sm:$0x1] %v1602_v17 }
 0x35b   :  { %1615 = dma.vmem_to_hbm [thread:$0]  %s1611_s28, 16, %s1613_s8, [#allocation5]  }
 0x35c   :  { %1909 = dma.done.wait [#allocation5], 16  }
 0x35d   :  { %1910 = vsyncadd [#allocation5], 4294967280 }
 0x35e   :  { %1620 = vsyncpa [#allocation4], 1 }
 0x35f   :  { %1621 = vsyncpa [#allocation7], 1 }
 0x360   :  { %1622 = vsyncpa [#allocation5], 1 }

</bundles_post_ra>
